<compile_context>
chip_gen: v5e
topology: v5e:2x2
jax: 0.10.0
libtpu: 0.0.40
codegen_flags: <defaults>
</compile_context>

<pallas_src>
import functools
import math

import jax
import jax.numpy as jnp
from jax.experimental import pallas as pl
from jax.experimental.pallas import tpu as pltpu


BN_SCALE = 1.0 / math.sqrt(1.0 + 1e-5)   # BatchNorm1d eval, running_mean=0 / running_var=1


def _bf16(x):
    return x.astype(jnp.bfloat16)


# ----------------------------------------------------------------------------------
# Kernel 1: fused TransformerEncoderLayer for the WHOLE batch in one grid step
#           (QKV -> per-(batch,head) attention -> out proj -> +res/LN -> FFN -> +res/LN
#            -> per-batch sum over the sequence)
# ----------------------------------------------------------------------------------
def _encoder_kernel(x_ref, mask_ref, wqkv_ref, bqkv_ref, wo_ref, bo_ref,
                    ln1g_ref, ln1b_ref, w1_ref, b1_ref, w2_ref, b2_ref,
                    ln2g_ref, ln2b_ref, seq_ref, sum_ref,
                    *, batch, seq_len, num_heads, scale):
    B, L, H = batch, seq_len, num_heads
    x = x_ref[...]                                     # (B*L, E) f32
    E = x.shape[1]
    Dh = E // H
    mask = mask_ref[...]                               # (B, L) additive key mask

    # Fused QKV projection for the whole batch: one (B*L, E) @ (E, 3E) MXU op (bf16 operands).
    qkv = jnp.dot(_bf16(x), _bf16(wqkv_ref[...]),
                  preferred_element_type=jnp.float32) + bqkv_ref[...]

    # Per-(batch, head) attention, statically unrolled (B*H is tiny at these shapes).
    # Head outputs are concatenated along lanes so the output projection is one matmul.
    rows = []
    for b in range(B):
        r0 = b * L
        heads = []
        for h in range(H):
            qh = qkv[r0:r0 + L, h * Dh:(h + 1) * Dh]
            kh = qkv[r0:r0 + L, E + h * Dh:E + (h + 1) * Dh]
            vh = qkv[r0:r0 + L, 2 * E + h * Dh:2 * E + (h + 1) * Dh]
            s = jnp.einsum('qd,kd->qk', _bf16(qh), _bf16(kh),
                           preferred_element_type=jnp.float32) * scale
            s = s + mask[b:b + 1, :]                   # key mask broadcast over query rows
            s = s - jnp.max(s, axis=-1, keepdims=True)
            p = jnp.exp(s)
            p = p * pl.reciprocal(jnp.sum(p, axis=-1, keepdims=True), approx=True)
            heads.append(jnp.dot(_bf16(p), _bf16(vh),
                                 preferred_element_type=jnp.float32))   # (L, Dh)
        rows.append(jnp.concatenate(heads, axis=-1))                    # (L, E)
    attn = jnp.concatenate(rows, axis=0)                                # (B*L, E)

    sa = jnp.dot(_bf16(attn), _bf16(wo_ref[...]),
                 preferred_element_type=jnp.float32) + bo_ref[...]

    # Residual + LayerNorm 1 (f32 VPU/EUP math)
    y = x + sa
    mu = jnp.mean(y, axis=-1, keepdims=True)
    var = jnp.mean(jnp.square(y - mu), axis=-1, keepdims=True)
    y = (y - mu) * jax.lax.rsqrt(var + 1e-5) * ln1g_ref[...] + ln1b_ref[...]

    # FFN: (B*L, E) @ (E, FF) -> ReLU -> (B*L, FF) @ (FF, E); intermediate stays in VMEM.
    hmid = jnp.maximum(jnp.dot(_bf16(y), _bf16(w1_ref[...]),
                               preferred_element_type=jnp.float32) + b1_ref[...], 0.0)
    ff = jnp.dot(_bf16(hmid), _bf16(w2_ref[...]),
                 preferred_element_type=jnp.float32) + b2_ref[...]

    # Residual + LayerNorm 2
    z = y + ff
    mu2 = jnp.mean(z, axis=-1, keepdims=True)
    var2 = jnp.mean(jnp.square(z - mu2), axis=-1, keepdims=True)
    out = (z - mu2) * jax.lax.rsqrt(var2 + 1e-5) * ln2g_ref[...] + ln2b_ref[...]

    seq_ref[...] = out                                                  # (B*L, E)
    sum_ref[...] = jnp.concatenate(                                     # torch.sum(dim=1)
        [jnp.sum(out[b * L:(b + 1) * L, :], axis=0, keepdims=True) for b in range(B)],
        axis=0)


def transformer_encoder_layer(x, key_mask, p, num_heads):
    """x: (B, L, E), key_mask: (B, L) additive. Returns (seq (B*L, E), sum (B, E))."""
    B, L, E = x.shape
    FF = p["w1"].shape[1]
    scale = 1.0 / math.sqrt(E // num_heads)
    c = lambda i: (0, 0)
    seq, ssum = pl.pallas_call(
        functools.partial(_encoder_kernel, batch=B, seq_len=L,
                          num_heads=num_heads, scale=scale),
        out_shape=(jax.ShapeDtypeStruct((B * L, E), jnp.float32),
                   jax.ShapeDtypeStruct((B, E), jnp.float32)),
        grid=(1,),
        in_specs=[
            pl.BlockSpec((B * L, E), c),                 # x (whole batch, one step)
            pl.BlockSpec((B, L), c),                     # key mask
            pl.BlockSpec((E, 3 * E), c), pl.BlockSpec((1, 3 * E), c),   # wqkv / bqkv
            pl.BlockSpec((E, E), c), pl.BlockSpec((1, E), c),           # wo / bo
            pl.BlockSpec((1, E), c), pl.BlockSpec((1, E), c),           # ln1 g/b
            pl.BlockSpec((E, FF), c), pl.BlockSpec((1, FF), c),         # w1 / b1
            pl.BlockSpec((FF, E), c), pl.BlockSpec((1, E), c),          # w2 / b2
            pl.BlockSpec((1, E), c), pl.BlockSpec((1, E), c),           # ln2 g/b
        ],
        out_specs=(pl.BlockSpec((B * L, E), c), pl.BlockSpec((B, E), c)),
        compiler_params=pltpu.CompilerParams(dimension_semantics=("arbitrary",)),
    )(x.reshape(B * L, E), key_mask, p["wqkv"], p["bqkv"], p["wo"], p["bo"],
      p["ln1_g"], p["ln1_b"], p["w1"], p["b1"], p["w2"], p["b2"],
      p["ln2_g"], p["ln2_b"])
    return seq, ssum


# ----------------------------------------------------------------------------------
# Kernel 2: whole GNNGraph (gin, virtual_node=True, JK='last', mean pooling) in ONE call.
#           Scatter-add / pooling are done in-kernel via one-hot matmuls (tiny matrices),
#           so no intermediate round-trips to HBM between GIN layers.
# ----------------------------------------------------------------------------------
def _gnn_kernel(h0_ref, eemb_ref, ssrc_ref, sdstt_ref, pool_ref, poolt_ref, invc_ref,
                mw1_ref, mb1_ref, mw2_ref, mb2_ref, vw1_ref, vb1_ref, vw2_ref, vb2_ref,
                out_ref, *, num_layer, eps):
    h = h0_ref[...]                                   # (N, E)
    s_src = ssrc_ref[...]                             # (nE, N) one-hot of edge src
    s_dst_t = sdstt_ref[...]                          # (N, nE) one-hot^T of edge dst
    pool = pool_ref[...]                              # (N, G) one-hot of graph id
    pool_t = poolt_ref[...]                           # (G, N)
    G = pool_t.shape[0]
    E = h.shape[1]
    vn = jnp.zeros((G, E), jnp.float32)               # virtual-node embedding (init 0)

    for layer in range(num_layer):                    # static unroll, weights stay in VMEM
        h_in = h + jnp.dot(pool, vn, preferred_element_type=jnp.float32)      # + vn[batch]
        # GINConv message passing: aggr[dst] += relu(h[src] + edge_emb)
        msg = jnp.maximum(jnp.dot(s_src, h_in, preferred_element_type=jnp.float32)
                          + eemb_ref[layer], 0.0)
        aggr = jnp.dot(s_dst_t, msg, preferred_element_type=jnp.float32)
        z = (1.0 + eps[layer]) * h_in + aggr
        # GIN MLP (Linear -> BN -> ReLU -> Linear) + outer BN [+ ReLU if not last layer]
        t = jnp.maximum(
            BN_SCALE * (jnp.dot(_bf16(z), _bf16(mw1_ref[layer]),
                                preferred_element_type=jnp.float32) + mb1_ref[layer]), 0.0)
        hn = BN_SCALE * (jnp.dot(_bf16(t), _bf16(mw2_ref[layer]),
                                 preferred_element_type=jnp.float32) + mb2_ref[layer])
        if layer < num_layer - 1:
            hn = jnp.maximum(hn, 0.0)
            # virtual-node update: global_add_pool(h_in) + vn -> MLP (2x Linear+BN+ReLU)
            vt = jnp.dot(pool_t, h_in, preferred_element_type=jnp.float32) + vn
            u = jnp.maximum(
                BN_SCALE * (jnp.dot(_bf16(vt), _bf16(vw1_ref[layer]),
                                    preferred_element_type=jnp.float32) + vb1_ref[layer]), 0.0)
            vn = jnp.maximum(
                BN_SCALE * (jnp.dot(_bf16(u), _bf16(vw2_ref[layer]),
                                    preferred_element_type=jnp.float32) + vb2_ref[layer]), 0.0)
        h = hn

    # JK='last' + global_mean_pool
    out_ref[...] = jnp.dot(pool_t, h, preferred_element_type=jnp.float32) * invc_ref[...]


def gnn_graph(p, x_idx, edge_index, edge_attr, batch, num_graphs, emb_dim):
    N = int(x_idx.shape[0])
    nE = int(edge_attr.shape[0])
    num_layer = p["num_layer"]
    E = emb_dim
    H2 = 2 * E

    # Embedding lookups + one-hot scatter/pool matrices: plain JAX glue.
    h0 = p["atom_emb"][x_idx]                                        # (N, E)
    edge_emb = p["bond_emb"][:, edge_attr, :]                        # (num_layer, nE, E)
    s_src = jax.nn.one_hot(edge_index[0], N, dtype=jnp.float32)      # (nE, N)
    s_dst_t = jax.nn.one_hot(edge_index[1], N, dtype=jnp.float32).T  # (N, nE)
    pool = jax.nn.one_hot(batch, num_graphs, dtype=jnp.float32)      # (N, G)
    pool_t = pool.T
    inv_cnt = 1.0 / jnp.maximum(jnp.sum(pool_t, axis=1, keepdims=True), 1.0)   # (G, 1)

    c2 = lambda i: (0, 0)
    c3 = lambda i: (0, 0, 0)
    return pl.pallas_call(
        functools.partial(_gnn_kernel, num_layer=num_layer, eps=p["eps"]),
        out_shape=jax.ShapeDtypeStruct((num_graphs, E), jnp.float32),
        grid=(1,),
        in_specs=[
            pl.BlockSpec((N, E), c2),
            pl.BlockSpec((num_layer, nE, E), c3),
            pl.BlockSpec((nE, N), c2),
            pl.BlockSpec((N, nE), c2),
            pl.BlockSpec((N, num_graphs), c2),
            pl.BlockSpec((num_graphs, N), c2),
            pl.BlockSpec((num_graphs, 1), c2),
            pl.BlockSpec((num_layer, E, H2), c3),
            pl.BlockSpec((num_layer, 1, H2), c3),
            pl.BlockSpec((num_layer, H2, E), c3),
            pl.BlockSpec((num_layer, 1, E), c3),
            pl.BlockSpec((num_layer - 1, E, H2), c3),
            pl.BlockSpec((num_layer - 1, 1, H2), c3),
            pl.BlockSpec((num_layer - 1, H2, E), c3),
            pl.BlockSpec((num_layer - 1, 1, E), c3),
        ],
        out_specs=pl.BlockSpec((num_graphs, E), c2),
        compiler_params=pltpu.CompilerParams(dimension_semantics=("arbitrary",)),
    )(h0, edge_emb, s_src, s_dst_t, pool, pool_t, inv_cnt,
      p["mlp_w1"], p["mlp_b1"], p["mlp_w2"], p["mlp_b2"],
      p["vn_w1"], p["vn_b1"], p["vn_w2"], p["vn_b2"])


# ----------------------------------------------------------------------------------
# Kernel 3 ("tail"): cross1 + cross2 (MHA + sum over queries) + simplified cross3
#                    + decoder projection + sigmoid + per-row DDI score, one call.
# ----------------------------------------------------------------------------------
def _tail_kernel(sub_ref, dseq_ref, pseq_ref, denc_ref, penc_ref,
                 wq1_ref, bq1_ref, wkv1_ref, bkv1_ref, wo1_ref, bo1_ref,
                 wq2_ref, bq2_ref, wkv2_ref, bkv2_ref, wo2_ref, bo2_ref,
                 wv3_ref, bv3_ref, wo3_ref, bo3_ref,
                 wdec_ref, bdec_ref, kg_ref,
                 out_ref, ddi_ref, *, batch, ld, lp, scale):
    B = batch
    sub = sub_ref[...]                                # (G, E) -- NOT broadcast per batch
    G, E = sub.shape
    sub_bf = _bf16(sub)

    def cross_sum(seq, L, wq_ref, bq_ref, wkv_ref, bkv_ref, wo_ref, bo_ref):
        # nn.MultiheadAttention(sub, seq, seq)[0].sum(dim=1), 1 head, all batches fused.
        q = jnp.dot(sub_bf, _bf16(wq_ref[...]),
                    preferred_element_type=jnp.float32) + bq_ref[...]          # (G, E)
        kv = jnp.dot(_bf16(seq), _bf16(wkv_ref[...]),
                     preferred_element_type=jnp.float32) + bkv_ref[...]         # (B*L, 2E)
        q_bf = _bf16(q)
        rows = []
        for b in range(B):
            kb = kv[b * L:(b + 1) * L, :E]
            vb = kv[b * L:(b + 1) * L, E:]
            s = jnp.einsum('qd,kd->qk', q_bf, _bf16(kb),
                           preferred_element_type=jnp.float32) * scale          # (G, L)
            s = s - jnp.max(s, axis=-1, keepdims=True)
            p = jnp.exp(s)
            p = p * pl.reciprocal(jnp.sum(p, axis=-1, keepdims=True), approx=True)
            pq = jnp.sum(p, axis=0, keepdims=True)       # sum over queries BEFORE the V matmul
            rows.append(jnp.dot(_bf16(pq), _bf16(vb),
                                preferred_element_type=jnp.float32))             # (1, E)
        av = jnp.concatenate(rows, axis=0)               # (B, E)
        # sum_q(attn @ Wo + bo) == (sum_q attn) @ Wo + Lq * bo
        return jnp.dot(_bf16(av), _bf16(wo_ref[...]),
                       preferred_element_type=jnp.float32) + float(G) * bo_ref[...]

    e1 = cross_sum(dseq_ref[...], ld, wq1_ref, bq1_ref, wkv1_ref, bkv1_ref, wo1_ref, bo1_ref)
    e2 = cross_sum(pseq_ref[...], lp, wq2_ref, bq2_ref, wkv2_ref, bkv2_ref, wo2_ref, bo2_ref)
    vcross = jnp.concatenate([e1, e2], axis=-1)          # (B, 2E)

    # crosssAtte3 with Lq = Lk = 1: softmax over a single key is identity, so Q/K
    # projections and the softmax are dead compute -> (x @ Wv + bv) @ Wo + bo.
    v3 = jnp.dot(_bf16(vcross), _bf16(wv3_ref[...]),
                 preferred_element_type=jnp.float32) + bv3_ref[...]
    e3 = jnp.dot(_bf16(v3), _bf16(wo3_ref[...]),
                 preferred_element_type=jnp.float32) + bo3_ref[...]              # (B, 2E)

    visit = jnp.concatenate([denc_ref[...], penc_ref[...], e3], axis=-1)          # (B, 4E)
    logits = jnp.dot(_bf16(visit), _bf16(wdec_ref[...]),
                     preferred_element_type=jnp.float32) + bdec_ref[...]          # (B, M)
    out_ref[...] = logits

    s = 1.0 / (1.0 + jnp.exp(-logits))                                            # sigmoid
    t = jnp.dot(s, kg_ref[...], preferred_element_type=jnp.float32)               # s @ kg
    ddi_ref[...] = jnp.sum(t * s, axis=-1, keepdims=True)                         # s kg s^T


def tail_fused(sub, diag_seq, proc_seq, diag_enc, proc_enc, c1, c2p, c3p,
               wdec, bdec, kg, *, batch, ld, lp, emb_dim):
    G = sub.shape[0]
    E = emb_dim
    M = wdec.shape[1]
    scale = 1.0 / math.sqrt(E)                       # cross1/cross2: 1 head, head_dim = E
    c = lambda i: (0, 0)
    return pl.pallas_call(
        functools.partial(_tail_kernel, batch=batch, ld=ld, lp=lp, scale=scale),
        out_shape=(jax.ShapeDtypeStruct((batch, M), jnp.float32),
                   jax.ShapeDtypeStruct((batch, 1), jnp.float32)),
        grid=(1,),
        in_specs=[
            pl.BlockSpec((G, E), c),
            pl.BlockSpec((batch * ld, E), c),
            pl.BlockSpec((batch * lp, E), c),
            pl.BlockSpec((batch, E), c),
            pl.BlockSpec((batch, E), c),
            pl.BlockSpec((E, E), c), pl.BlockSpec((1, E), c),            # cross1 q
            pl.BlockSpec((E, 2 * E), c), pl.BlockSpec((1, 2 * E), c),    # cross1 kv
            pl.BlockSpec((E, E), c), pl.BlockSpec((1, E), c),            # cross1 out
            pl.BlockSpec((E, E), c), pl.BlockSpec((1, E), c),            # cross2 q
            pl.BlockSpec((E, 2 * E), c), pl.BlockSpec((1, 2 * E), c),    # cross2 kv
            pl.BlockSpec((E, E), c), pl.BlockSpec((1, E), c),            # cross2 out
            pl.BlockSpec((2 * E, 2 * E), c), pl.BlockSpec((1, 2 * E), c),  # cross3 v
            pl.BlockSpec((2 * E, 2 * E), c), pl.BlockSpec((1, 2 * E), c),  # cross3 out
            pl.BlockSpec((4 * E, M), c), pl.BlockSpec((1, M), c),        # decoder
            pl.BlockSpec((M, M), c),                                     # ddi adjacency
        ],
        out_specs=(pl.BlockSpec((batch, M), c), pl.BlockSpec((batch, 1), c)),
        compiler_params=pltpu.CompilerParams(dimension_semantics=("arbitrary",)),
    )(sub, diag_seq, proc_seq, diag_enc, proc_enc,
      c1["wq"], c1["bq"], c1["wkv"], c1["bkv"], c1["wo"], c1["bo"],
      c2p["wq"], c2p["bq"], c2p["wkv"], c2p["bkv"], c2p["wo"], c2p["bo"],
      c3p["wv"], c3p["bv"], c3p["wo"], c3p["bo"],
      wdec, bdec, kg)


# ----------------------------------------------------------------------------------
# Parameter initialization (deterministic, synthetic)
# ----------------------------------------------------------------------------------
def _nrm(key, shape, scale=0.1):
    return scale * jax.random.normal(key, shape, dtype=jnp.float32)


class KeyGen:
    def __init__(self, key):
        self.key = key

    def __call__(self):
        self.key, sub = jax.random.split(self.key)
        return sub


def init_cross_mha(kg, e):
    return dict(
        wq=_nrm(kg(), (e, e)), bq=jnp.zeros((1, e), jnp.float32),
        wkv=_nrm(kg(), (e, 2 * e)), bkv=jnp.zeros((1, 2 * e), jnp.float32),
        wo=_nrm(kg(), (e, e)), bo=jnp.zeros((1, e), jnp.float32),
    )


def init_cross3(kg, e2):
    # Only V / output projections are needed: with a single query/key the softmax is
    # identity and the Q/K projections of crosssAtte3 never affect the output.
    return dict(
        wv=_nrm(kg(), (e2, e2)), bv=jnp.zeros((1, e2), jnp.float32),
        wo=_nrm(kg(), (e2, e2)), bo=jnp.zeros((1, e2), jnp.float32),
    )


def init_encoder_layer(kg, e, ff):
    return dict(
        wqkv=_nrm(kg(), (e, 3 * e)), bqkv=jnp.zeros((1, 3 * e), jnp.float32),
        wo=_nrm(kg(), (e, e)), bo=jnp.zeros((1, e), jnp.float32),
        ln1_g=jnp.ones((1, e), jnp.float32), ln1_b=jnp.zeros((1, e), jnp.float32),
        w1=_nrm(kg(), (e, ff)), b1=jnp.zeros((1, ff), jnp.float32),
        w2=_nrm(kg(), (ff, e)), b2=jnp.zeros((1, e), jnp.float32),
        ln2_g=jnp.ones((1, e), jnp.float32), ln2_b=jnp.zeros((1, e), jnp.float32),
    )


def init_gnn(kg, e, num_layer, atom_vocab, bond_vocab):
    return dict(
        num_layer=num_layer,
        eps=tuple(0.0 for _ in range(num_layer)),           # torch.nn.Parameter([0])
        atom_emb=_nrm(kg(), (atom_vocab, e)),
        bond_emb=_nrm(kg(), (num_layer, bond_vocab, e)),
        mlp_w1=_nrm(kg(), (num_layer, e, 2 * e)),
        mlp_b1=jnp.zeros((num_layer, 1, 2 * e), jnp.float32),
        mlp_w2=_nrm(kg(), (num_layer, 2 * e, e)),
        mlp_b2=jnp.zeros((num_layer, 1, e), jnp.float32),
        vn_w1=_nrm(kg(), (num_layer - 1, e, 2 * e)),
        vn_b1=jnp.zeros((num_layer - 1, 1, 2 * e), jnp.float32),
        vn_w2=_nrm(kg(), (num_layer - 1, 2 * e, e)),
        vn_b2=jnp.zeros((num_layer - 1, 1, e), jnp.float32),
    )


def init_params(key, voc_size, emb_dim, gnn_layers, atom_vocab, bond_vocab, ff=2048):
    kg = KeyGen(key)
    diag_pad = voc_size[0] + 2
    proc_pad = voc_size[1] + 2
    diag_table = _nrm(kg(), (voc_size[0] + 3, emb_dim)).at[diag_pad].set(0.0)
    proc_table = _nrm(kg(), (voc_size[1] + 3, emb_dim)).at[proc_pad].set(0.0)
    return dict(
        diag_table=diag_table,
        proc_table=proc_table,
        diag_enc=init_encoder_layer(kg, emb_dim, ff),
        proc_enc=init_encoder_layer(kg, emb_dim, ff),
        cross1=init_cross_mha(kg, emb_dim),
        cross2=init_cross_mha(kg, emb_dim),
        cross3=init_cross3(kg, emb_dim * 2),
        gnn=init_gnn(kg, emb_dim, gnn_layers, atom_vocab, bond_vocab),
        out2_w=_nrm(kg(), (emb_dim * 4, voc_size[2])),
        out2_b=jnp.zeros((1, voc_size[2]), jnp.float32),
    )


# ----------------------------------------------------------------------------------
# AIModel.forward (eval mode, empty histories)
# ----------------------------------------------------------------------------------
def ai_model_forward(params, diagnose, procedures, d_mask, p_mask,
                     sub_x, sub_edge_index, sub_edge_attr, sub_batch, num_graphs,
                     ddi_adj, kgloss_alpha, emb_dim, nhead=2):
    B, Ld = diagnose.shape
    Lp = procedures.shape[1]

    # Embedding lookups (+Dropout = identity in eval): plain XLA gathers.
    diag_emb = params["diag_table"][diagnose]                 # (B, Ld, E)
    proc_emb = params["proc_table"][procedures]               # (B, Lp, E)

    # One fused pallas_call per encoder layer; whole batch in one grid step, seq-sum fused.
    diag_seq, diag_enc = transformer_encoder_layer(diag_emb, d_mask, params["diag_enc"], nhead)
    proc_seq, proc_enc = transformer_encoder_layer(proc_emb, p_mask, params["proc_enc"], nhead)

    # Whole GNNGraph in one pallas_call.
    substruct_info = gnn_graph(params["gnn"], sub_x, sub_edge_index, sub_edge_attr,
                               sub_batch, num_graphs, emb_dim)            # (G, E)

    # One fused tail kernel: cross1 + cross2 + (simplified) cross3 + decoder + DDI score.
    decoder_output, per_batch_ddi = tail_fused(
        substruct_info, diag_seq, proc_seq, diag_enc, proc_enc,
        params["cross1"], params["cross2"], params["cross3"],
        params["out2_w"], params["out2_b"], ddi_adj,
        batch=B, ld=Ld, lp=Lp, emb_dim=emb_dim)

    # TODO(synk): the per-sample history branch (used_diag/used_proc/used_medications with
    # crosssAtte4/5/6, output_layer1 and the GRU-based used_med_learning) is a Python-level
    # data-dependent loop over ragged lists; with empty histories (as here) the PyTorch
    # forward skips it entirely, so it is not lowered to Pallas.

    kg_ddi_score = 0.001 * kgloss_alpha * jnp.mean(per_batch_ddi)
    return decoder_output, kg_ddi_score


# ----------------------------------------------------------------------------------
# Main
# ----------------------------------------------------------------------------------
if __name__ == "__main__":
    key = jax.random.PRNGKey(0)
    kg = KeyGen(key)

    # Small synthetic config
    voc_size = (20, 16, 12)        # (diag, proc, med)
    emb_dim = 32
    B, Ld, Lp = 2, 8, 6
    DIAG_PAD = voc_size[0] + 2
    PROC_PAD = voc_size[1] + 2
    kgloss_alpha = 0.5
    gnn_layers, atom_vocab, bond_vocab = 2, 8, 4
    num_graphs, n_nodes, n_edges = 3, 10, 14

    params = init_params(kg(), voc_size, emb_dim, gnn_layers, atom_vocab, bond_vocab)

    # Diagnoses / procedures with padding (pad key positions masked with large negative value)
    diagnose = jax.random.randint(kg(), (B, Ld), 0, voc_size[0], dtype=jnp.int32)
    procedures = jax.random.randint(kg(), (B, Lp), 0, voc_size[1], dtype=jnp.int32)
    diagnose = diagnose.at[:, -2:].set(DIAG_PAD)
    procedures = procedures.at[:, -1:].set(PROC_PAD)
    d_mask = jnp.where(diagnose == DIAG_PAD, -1e9, 0.0).astype(jnp.float32)
    p_mask = jnp.where(procedures == PROC_PAD, -1e9, 0.0).astype(jnp.float32)

    # Substructure graph batch (3 small molecular graphs, flat node/edge lists)
    sub_x = jax.random.randint(kg(), (n_nodes,), 0, atom_vocab, dtype=jnp.int32)
    sub_edge_index = jax.random.randint(kg(), (2, n_edges), 0, n_nodes, dtype=jnp.int32)
    sub_edge_attr = jax.random.randint(kg(), (n_edges,), 0, bond_vocab, dtype=jnp.int32)
    sub_batch = jnp.array([0, 0, 0, 0, 1, 1, 1, 2, 2, 2], dtype=jnp.int32)

    # DDI adjacency (symmetric 0/1)
    ddi_raw = (jax.random.uniform(kg(), (voc_size[2], voc_size[2])) > 0.7).astype(jnp.float32)
    ddi_adj = jnp.maximum(ddi_raw, ddi_raw.T)

    decoder_output, kg_ddi = ai_model_forward(
        params, diagnose, procedures, d_mask, p_mask,
        sub_x, sub_edge_index, sub_edge_attr, sub_batch, num_graphs,
        ddi_adj, kgloss_alpha, emb_dim)

    jax.block_until_ready(decoder_output)
    jax.block_until_ready(kg_ddi)
    assert decoder_output.shape == (B, voc_size[2])
    assert kg_ddi.shape == ()
    assert bool(jnp.all(jnp.isfinite(decoder_output)))
    assert bool(jnp.isfinite(kg_ddi))
    print("KERNEL_OK")
</pallas_src>

<mosaic_0001>
module attributes {stable_mosaic.version = 11 : i64} {
  func.func @_encoder_kernel(%arg0: i32, %arg1: memref<16x32xf32, #tpu.memory_space<vmem>>, %arg2: memref<2x8xf32, #tpu.memory_space<vmem>>, %arg3: memref<32x96xf32, #tpu.memory_space<vmem>>, %arg4: memref<1x96xf32, #tpu.memory_space<vmem>>, %arg5: memref<32x32xf32, #tpu.memory_space<vmem>>, %arg6: memref<1x32xf32, #tpu.memory_space<vmem>>, %arg7: memref<1x32xf32, #tpu.memory_space<vmem>>, %arg8: memref<1x32xf32, #tpu.memory_space<vmem>>, %arg9: memref<32x2048xf32, #tpu.memory_space<vmem>>, %arg10: memref<1x2048xf32, #tpu.memory_space<vmem>>, %arg11: memref<2048x32xf32, #tpu.memory_space<vmem>>, %arg12: memref<1x32xf32, #tpu.memory_space<vmem>>, %arg13: memref<1x32xf32, #tpu.memory_space<vmem>>, %arg14: memref<1x32xf32, #tpu.memory_space<vmem>>, %arg15: memref<16x32xf32, #tpu.memory_space<vmem>>, %arg16: memref<2x32xf32, #tpu.memory_space<vmem>>) attributes {dimension_semantics = [#tpu.dimension_semantics<arbitrary>], iteration_bounds = array<i64: 1>, scalar_prefetch = 0 : i64, scratch_operands = 0 : i64, tpu.core_type = #tpu.core_type<tc>, window_params = [{pipeline_mode = #tpu.pipeline_mode<synchronous>, transform_indices = @transform_0, window_bounds = array<i64: 16, 32>}, {pipeline_mode = #tpu.pipeline_mode<synchronous>, transform_indices = @transform_1, window_bounds = array<i64: 2, 8>}, {pipeline_mode = #tpu.pipeline_mode<synchronous>, transform_indices = @transform_2, window_bounds = array<i64: 32, 96>}, {pipeline_mode = #tpu.pipeline_mode<synchronous>, transform_indices = @transform_3, window_bounds = array<i64: 1, 96>}, {pipeline_mode = #tpu.pipeline_mode<synchronous>, transform_indices = @transform_4, window_bounds = array<i64: 32, 32>}, {pipeline_mode = #tpu.pipeline_mode<synchronous>, transform_indices = @transform_5, window_bounds = array<i64: 1, 32>}, {pipeline_mode = #tpu.pipeline_mode<synchronous>, transform_indices = @transform_6, window_bounds = array<i64: 1, 32>}, {pipeline_mode = #tpu.pipeline_mode<synchronous>, transform_indices = @transform_7, window_bounds = array<i64: 1, 32>}, {pipeline_mode = #tpu.pipeline_mode<synchronous>, transform_indices = @transform_8, window_bounds = array<i64: 32, 2048>}, {pipeline_mode = #tpu.pipeline_mode<synchronous>, transform_indices = @transform_9, window_bounds = array<i64: 1, 2048>}, {pipeline_mode = #tpu.pipeline_mode<synchronous>, transform_indices = @transform_10, window_bounds = array<i64: 2048, 32>}, {pipeline_mode = #tpu.pipeline_mode<synchronous>, transform_indices = @transform_11, window_bounds = array<i64: 1, 32>}, {pipeline_mode = #tpu.pipeline_mode<synchronous>, transform_indices = @transform_12, window_bounds = array<i64: 1, 32>}, {pipeline_mode = #tpu.pipeline_mode<synchronous>, transform_indices = @transform_13, window_bounds = array<i64: 1, 32>}, {pipeline_mode = #tpu.pipeline_mode<synchronous>, transform_indices = @transform_14, window_bounds = array<i64: 16, 32>}, {pipeline_mode = #tpu.pipeline_mode<synchronous>, transform_indices = @transform_15, window_bounds = array<i64: 2, 32>}]} {
    %c0 = arith.constant 0 : index
    %c0_0 = arith.constant 0 : index
    %0 = vector.load %arg1[%c0, %c0_0] : memref<16x32xf32, #tpu.memory_space<vmem>>, vector<16x32xf32>
    %c0_1 = arith.constant 0 : index
    %c0_2 = arith.constant 0 : index
    %1 = vector.load %arg2[%c0_1, %c0_2] : memref<2x8xf32, #tpu.memory_space<vmem>>, vector<2x8xf32>
    %2 = arith.truncf %0 : vector<16x32xf32> to vector<16x32xbf16>
    %c0_3 = arith.constant 0 : index
    %c0_4 = arith.constant 0 : index
    %3 = vector.load %arg3[%c0_3, %c0_4] : memref<32x96xf32, #tpu.memory_space<vmem>>, vector<32x96xf32>
    %4 = arith.truncf %3 : vector<32x96xf32> to vector<32x96xbf16>
    %cst = arith.constant dense<0.000000e+00> : vector<16x96xf32>
    %5 = tpu.matmul %2, %4, %cst {dimension_numbers = #tpu.dot_dimension_numbers<[1], [0], [0], [1], [0, 0, 1, 1], [], []>} : vector<16x32xbf16>, vector<32x96xbf16>, vector<16x96xf32> -> vector<16x96xf32>
    %c0_5 = arith.constant 0 : index
    %c0_6 = arith.constant 0 : index
    %6 = vector.load %arg4[%c0_5, %c0_6] : memref<1x96xf32, #tpu.memory_space<vmem>>, vector<1x96xf32>
    %7 = vector.broadcast %6 : vector<1x96xf32> to vector<16x96xf32>
    %8 = arith.addf %5, %7 : vector<16x96xf32>
    %9 = vector.extract_strided_slice %8 {offsets = [0, 0], sizes = [8, 16], strides = [1, 1]} : vector<16x96xf32> to vector<8x16xf32>
    %10 = vector.extract_strided_slice %8 {offsets = [0, 32], sizes = [8, 16], strides = [1, 1]} : vector<16x96xf32> to vector<8x16xf32>
    %11 = vector.extract_strided_slice %8 {offsets = [0, 64], sizes = [8, 16], strides = [1, 1]} : vector<16x96xf32> to vector<8x16xf32>
    %12 = arith.truncf %9 : vector<8x16xf32> to vector<8x16xbf16>
    %13 = arith.truncf %10 : vector<8x16xf32> to vector<8x16xbf16>
    "tpu.trace_start"() <{level = 10 : i32, message = "qd,kd->qk"}> : () -> ()
    %cst_7 = arith.constant dense<0.000000e+00> : vector<8x8xf32>
    %14 = tpu.matmul %12, %13, %cst_7 {dimension_numbers = #tpu.dot_dimension_numbers<[1], [1], [0], [0], [0, 0, 1, 0], [], []>} : vector<8x16xbf16>, vector<8x16xbf16>, vector<8x8xf32> -> vector<8x8xf32>
    "tpu.trace_stop"() : () -> ()
    %cst_8 = arith.constant 2.500000e-01 : f32
    %15 = vector.broadcast %cst_8 : f32 to vector<8x8xf32>
    %16 = arith.mulf %14, %15 : vector<8x8xf32>
    %17 = vector.extract_strided_slice %1 {offsets = [0, 0], sizes = [1, 8], strides = [1, 1]} : vector<2x8xf32> to vector<1x8xf32>
    %18 = vector.broadcast %17 : vector<1x8xf32> to vector<8x8xf32>
    %19 = arith.addf %16, %18 : vector<8x8xf32>
    %cst_9 = arith.constant dense<0xFF800000> : vector<8xf32>
    %20 = vector.multi_reduction <maximumf>, %19, %cst_9 [1] : vector<8x8xf32> to vector<8xf32>
    %21 = vector.shape_cast %20 : vector<8xf32> to vector<8x1xf32>
    %22 = vector.broadcast %21 : vector<8x1xf32> to vector<8x8xf32>
    %23 = arith.subf %19, %22 : vector<8x8xf32>
    %24 = math.exp %23 : vector<8x8xf32>
    %cst_10 = arith.constant dense<0.000000e+00> : vector<8xf32>
    %25 = vector.multi_reduction <add>, %24, %cst_10 [1] : vector<8x8xf32> to vector<8xf32>
    %26 = vector.shape_cast %25 : vector<8xf32> to vector<8x1xf32>
    %27 = tpu.reciprocal %26 {approx = true} : vector<8x1xf32> -> vector<8x1xf32>
    %28 = vector.broadcast %27 : vector<8x1xf32> to vector<8x8xf32>
    %29 = arith.mulf %24, %28 : vector<8x8xf32>
    %30 = arith.truncf %29 : vector<8x8xf32> to vector<8x8xbf16>
    %31 = arith.truncf %11 : vector<8x16xf32> to vector<8x16xbf16>
    %cst_11 = arith.constant dense<0.000000e+00> : vector<8x16xf32>
    %32 = tpu.matmul %30, %31, %cst_11 {dimension_numbers = #tpu.dot_dimension_numbers<[1], [0], [0], [1], [0, 0, 1, 1], [], []>} : vector<8x8xbf16>, vector<8x16xbf16>, vector<8x16xf32> -> vector<8x16xf32>
    %33 = vector.extract_strided_slice %8 {offsets = [0, 16], sizes = [8, 16], strides = [1, 1]} : vector<16x96xf32> to vector<8x16xf32>
    %34 = vector.extract_strided_slice %8 {offsets = [0, 48], sizes = [8, 16], strides = [1, 1]} : vector<16x96xf32> to vector<8x16xf32>
    %35 = vector.extract_strided_slice %8 {offsets = [0, 80], sizes = [8, 16], strides = [1, 1]} : vector<16x96xf32> to vector<8x16xf32>
    %36 = arith.truncf %33 : vector<8x16xf32> to vector<8x16xbf16>
    %37 = arith.truncf %34 : vector<8x16xf32> to vector<8x16xbf16>
    "tpu.trace_start"() <{level = 10 : i32, message = "qd,kd->qk"}> : () -> ()
    %cst_12 = arith.constant dense<0.000000e+00> : vector<8x8xf32>
    %38 = tpu.matmul %36, %37, %cst_12 {dimension_numbers = #tpu.dot_dimension_numbers<[1], [1], [0], [0], [0, 0, 1, 0], [], []>} : vector<8x16xbf16>, vector<8x16xbf16>, vector<8x8xf32> -> vector<8x8xf32>
    "tpu.trace_stop"() : () -> ()
    %cst_13 = arith.constant 2.500000e-01 : f32
    %39 = vector.broadcast %cst_13 : f32 to vector<8x8xf32>
    %40 = arith.mulf %38, %39 : vector<8x8xf32>
    %41 = vector.extract_strided_slice %1 {offsets = [0, 0], sizes = [1, 8], strides = [1, 1]} : vector<2x8xf32> to vector<1x8xf32>
    %42 = vector.broadcast %41 : vector<1x8xf32> to vector<8x8xf32>
    %43 = arith.addf %40, %42 : vector<8x8xf32>
    %cst_14 = arith.constant dense<0xFF800000> : vector<8xf32>
    %44 = vector.multi_reduction <maximumf>, %43, %cst_14 [1] : vector<8x8xf32> to vector<8xf32>
    %45 = vector.shape_cast %44 : vector<8xf32> to vector<8x1xf32>
    %46 = vector.broadcast %45 : vector<8x1xf32> to vector<8x8xf32>
    %47 = arith.subf %43, %46 : vector<8x8xf32>
    %48 = math.exp %47 : vector<8x8xf32>
    %cst_15 = arith.constant dense<0.000000e+00> : vector<8xf32>
    %49 = vector.multi_reduction <add>, %48, %cst_15 [1] : vector<8x8xf32> to vector<8xf32>
    %50 = vector.shape_cast %49 : vector<8xf32> to vector<8x1xf32>
    %51 = tpu.reciprocal %50 {approx = true} : vector<8x1xf32> -> vector<8x1xf32>
    %52 = vector.broadcast %51 : vector<8x1xf32> to vector<8x8xf32>
    %53 = arith.mulf %48, %52 : vector<8x8xf32>
    %54 = arith.truncf %53 : vector<8x8xf32> to vector<8x8xbf16>
    %55 = arith.truncf %35 : vector<8x16xf32> to vector<8x16xbf16>
    %cst_16 = arith.constant dense<0.000000e+00> : vector<8x16xf32>
    %56 = tpu.matmul %54, %55, %cst_16 {dimension_numbers = #tpu.dot_dimension_numbers<[1], [0], [0], [1], [0, 0, 1, 1], [], []>} : vector<8x8xbf16>, vector<8x16xbf16>, vector<8x16xf32> -> vector<8x16xf32>
    %57 = tpu.concatenate %32, %56 in 1 : vector<8x16xf32>, vector<8x16xf32> -> vector<8x32xf32>
    %58 = vector.extract_strided_slice %8 {offsets = [8, 0], sizes = [8, 16], strides = [1, 1]} : vector<16x96xf32> to vector<8x16xf32>
    %59 = vector.extract_strided_slice %8 {offsets = [8, 32], sizes = [8, 16], strides = [1, 1]} : vector<16x96xf32> to vector<8x16xf32>
    %60 = vector.extract_strided_slice %8 {offsets = [8, 64], sizes = [8, 16], strides = [1, 1]} : vector<16x96xf32> to vector<8x16xf32>
    %61 = arith.truncf %58 : vector<8x16xf32> to vector<8x16xbf16>
    %62 = arith.truncf %59 : vector<8x16xf32> to vector<8x16xbf16>
    "tpu.trace_start"() <{level = 10 : i32, message = "qd,kd->qk"}> : () -> ()
    %cst_17 = arith.constant dense<0.000000e+00> : vector<8x8xf32>
    %63 = tpu.matmul %61, %62, %cst_17 {dimension_numbers = #tpu.dot_dimension_numbers<[1], [1], [0], [0], [0, 0, 1, 0], [], []>} : vector<8x16xbf16>, vector<8x16xbf16>, vector<8x8xf32> -> vector<8x8xf32>
    "tpu.trace_stop"() : () -> ()
    %cst_18 = arith.constant 2.500000e-01 : f32
    %64 = vector.broadcast %cst_18 : f32 to vector<8x8xf32>
    %65 = arith.mulf %63, %64 : vector<8x8xf32>
    %66 = vector.extract_strided_slice %1 {offsets = [1, 0], sizes = [1, 8], strides = [1, 1]} : vector<2x8xf32> to vector<1x8xf32>
    %67 = vector.broadcast %66 : vector<1x8xf32> to vector<8x8xf32>
    %68 = arith.addf %65, %67 : vector<8x8xf32>
    %cst_19 = arith.constant dense<0xFF800000> : vector<8xf32>
    %69 = vector.multi_reduction <maximumf>, %68, %cst_19 [1] : vector<8x8xf32> to vector<8xf32>
    %70 = vector.shape_cast %69 : vector<8xf32> to vector<8x1xf32>
    %71 = vector.broadcast %70 : vector<8x1xf32> to vector<8x8xf32>
    %72 = arith.subf %68, %71 : vector<8x8xf32>
    %73 = math.exp %72 : vector<8x8xf32>
    %cst_20 = arith.constant dense<0.000000e+00> : vector<8xf32>
    %74 = vector.multi_reduction <add>, %73, %cst_20 [1] : vector<8x8xf32> to vector<8xf32>
    %75 = vector.shape_cast %74 : vector<8xf32> to vector<8x1xf32>
    %76 = tpu.reciprocal %75 {approx = true} : vector<8x1xf32> -> vector<8x1xf32>
    %77 = vector.broadcast %76 : vector<8x1xf32> to vector<8x8xf32>
    %78 = arith.mulf %73, %77 : vector<8x8xf32>
    %79 = arith.truncf %78 : vector<8x8xf32> to vector<8x8xbf16>
    %80 = arith.truncf %60 : vector<8x16xf32> to vector<8x16xbf16>
    %cst_21 = arith.constant dense<0.000000e+00> : vector<8x16xf32>
    %81 = tpu.matmul %79, %80, %cst_21 {dimension_numbers = #tpu.dot_dimension_numbers<[1], [0], [0], [1], [0, 0, 1, 1], [], []>} : vector<8x8xbf16>, vector<8x16xbf16>, vector<8x16xf32> -> vector<8x16xf32>
    %82 = vector.extract_strided_slice %8 {offsets = [8, 16], sizes = [8, 16], strides = [1, 1]} : vector<16x96xf32> to vector<8x16xf32>
    %83 = vector.extract_strided_slice %8 {offsets = [8, 48], sizes = [8, 16], strides = [1, 1]} : vector<16x96xf32> to vector<8x16xf32>
    %84 = vector.extract_strided_slice %8 {offsets = [8, 80], sizes = [8, 16], strides = [1, 1]} : vector<16x96xf32> to vector<8x16xf32>
    %85 = arith.truncf %82 : vector<8x16xf32> to vector<8x16xbf16>
    %86 = arith.truncf %83 : vector<8x16xf32> to vector<8x16xbf16>
    "tpu.trace_start"() <{level = 10 : i32, message = "qd,kd->qk"}> : () -> ()
    %cst_22 = arith.constant dense<0.000000e+00> : vector<8x8xf32>
    %87 = tpu.matmul %85, %86, %cst_22 {dimension_numbers = #tpu.dot_dimension_numbers<[1], [1], [0], [0], [0, 0, 1, 0], [], []>} : vector<8x16xbf16>, vector<8x16xbf16>, vector<8x8xf32> -> vector<8x8xf32>
    "tpu.trace_stop"() : () -> ()
    %cst_23 = arith.constant 2.500000e-01 : f32
    %88 = vector.broadcast %cst_23 : f32 to vector<8x8xf32>
    %89 = arith.mulf %87, %88 : vector<8x8xf32>
    %90 = vector.extract_strided_slice %1 {offsets = [1, 0], sizes = [1, 8], strides = [1, 1]} : vector<2x8xf32> to vector<1x8xf32>
    %91 = vector.broadcast %90 : vector<1x8xf32> to vector<8x8xf32>
    %92 = arith.addf %89, %91 : vector<8x8xf32>
    %cst_24 = arith.constant dense<0xFF800000> : vector<8xf32>
    %93 = vector.multi_reduction <maximumf>, %92, %cst_24 [1] : vector<8x8xf32> to vector<8xf32>
    %94 = vector.shape_cast %93 : vector<8xf32> to vector<8x1xf32>
    %95 = vector.broadcast %94 : vector<8x1xf32> to vector<8x8xf32>
    %96 = arith.subf %92, %95 : vector<8x8xf32>
    %97 = math.exp %96 : vector<8x8xf32>
    %cst_25 = arith.constant dense<0.000000e+00> : vector<8xf32>
    %98 = vector.multi_reduction <add>, %97, %cst_25 [1] : vector<8x8xf32> to vector<8xf32>
    %99 = vector.shape_cast %98 : vector<8xf32> to vector<8x1xf32>
    %100 = tpu.reciprocal %99 {approx = true} : vector<8x1xf32> -> vector<8x1xf32>
    %101 = vector.broadcast %100 : vector<8x1xf32> to vector<8x8xf32>
    %102 = arith.mulf %97, %101 : vector<8x8xf32>
    %103 = arith.truncf %102 : vector<8x8xf32> to vector<8x8xbf16>
    %104 = arith.truncf %84 : vector<8x16xf32> to vector<8x16xbf16>
    %cst_26 = arith.constant dense<0.000000e+00> : vector<8x16xf32>
    %105 = tpu.matmul %103, %104, %cst_26 {dimension_numbers = #tpu.dot_dimension_numbers<[1], [0], [0], [1], [0, 0, 1, 1], [], []>} : vector<8x8xbf16>, vector<8x16xbf16>, vector<8x16xf32> -> vector<8x16xf32>
    %106 = tpu.concatenate %81, %105 in 1 : vector<8x16xf32>, vector<8x16xf32> -> vector<8x32xf32>
    %107 = tpu.concatenate %57, %106 in 0 : vector<8x32xf32>, vector<8x32xf32> -> vector<16x32xf32>
    %108 = arith.truncf %107 : vector<16x32xf32> to vector<16x32xbf16>
    %c0_27 = arith.constant 0 : index
    %c0_28 = arith.constant 0 : index
    %109 = vector.load %arg5[%c0_27, %c0_28] : memref<32x32xf32, #tpu.memory_space<vmem>>, vector<32x32xf32>
    %110 = arith.truncf %109 : vector<32x32xf32> to vector<32x32xbf16>
    %cst_29 = arith.constant dense<0.000000e+00> : vector<16x32xf32>
    %111 = tpu.matmul %108, %110, %cst_29 {dimension_numbers = #tpu.dot_dimension_numbers<[1], [0], [0], [1], [0, 0, 1, 1], [], []>} : vector<16x32xbf16>, vector<32x32xbf16>, vector<16x32xf32> -> vector<16x32xf32>
    %c0_30 = arith.constant 0 : index
    %c0_31 = arith.constant 0 : index
    %112 = vector.load %arg6[%c0_30, %c0_31] : memref<1x32xf32, #tpu.memory_space<vmem>>, vector<1x32xf32>
    %113 = vector.broadcast %112 : vector<1x32xf32> to vector<16x32xf32>
    %114 = arith.addf %111, %113 : vector<16x32xf32>
    %115 = arith.addf %0, %114 : vector<16x32xf32>
    %cst_32 = arith.constant dense<0.000000e+00> : vector<16xf32>
    %116 = vector.multi_reduction <add>, %115, %cst_32 [1] : vector<16x32xf32> to vector<16xf32>
    %117 = vector.shape_cast %116 : vector<16xf32> to vector<16x1xf32>
    %cst_33 = arith.constant 3.200000e+01 : f32
    %118 = vector.broadcast %cst_33 : f32 to vector<16x1xf32>
    %119 = arith.divf %117, %118 : vector<16x1xf32>
    %120 = vector.broadcast %119 : vector<16x1xf32> to vector<16x32xf32>
    %121 = arith.subf %115, %120 : vector<16x32xf32>
    %122 = arith.mulf %121, %121 : vector<16x32xf32>
    %cst_34 = arith.constant dense<0.000000e+00> : vector<16xf32>
    %123 = vector.multi_reduction <add>, %122, %cst_34 [1] : vector<16x32xf32> to vector<16xf32>
    %124 = vector.shape_cast %123 : vector<16xf32> to vector<16x1xf32>
    %cst_35 = arith.constant 3.200000e+01 : f32
    %125 = vector.broadcast %cst_35 : f32 to vector<16x1xf32>
    %126 = arith.divf %124, %125 : vector<16x1xf32>
    %127 = vector.broadcast %119 : vector<16x1xf32> to vector<16x32xf32>
    %128 = arith.subf %115, %127 : vector<16x32xf32>
    %cst_36 = arith.constant 9.99999974E-6 : f32
    %129 = vector.broadcast %cst_36 : f32 to vector<16x1xf32>
    %130 = arith.addf %126, %129 : vector<16x1xf32>
    %131 = math.rsqrt %130 : vector<16x1xf32>
    %132 = vector.broadcast %131 : vector<16x1xf32> to vector<16x32xf32>
    %133 = arith.mulf %128, %132 : vector<16x32xf32>
    %c0_37 = arith.constant 0 : index
    %c0_38 = arith.constant 0 : index
    %134 = vector.load %arg7[%c0_37, %c0_38] : memref<1x32xf32, #tpu.memory_space<vmem>>, vector<1x32xf32>
    %135 = vector.broadcast %134 : vector<1x32xf32> to vector<16x32xf32>
    %136 = arith.mulf %133, %135 : vector<16x32xf32>
    %c0_39 = arith.constant 0 : index
    %c0_40 = arith.constant 0 : index
    %137 = vector.load %arg8[%c0_39, %c0_40] : memref<1x32xf32, #tpu.memory_space<vmem>>, vector<1x32xf32>
    %138 = vector.broadcast %137 : vector<1x32xf32> to vector<16x32xf32>
    %139 = arith.addf %136, %138 : vector<16x32xf32>
    %140 = arith.truncf %139 : vector<16x32xf32> to vector<16x32xbf16>
    %c0_41 = arith.constant 0 : index
    %c0_42 = arith.constant 0 : index
    %141 = vector.load %arg9[%c0_41, %c0_42] : memref<32x2048xf32, #tpu.memory_space<vmem>>, vector<32x2048xf32>
    %142 = arith.truncf %141 : vector<32x2048xf32> to vector<32x2048xbf16>
    %cst_43 = arith.constant dense<0.000000e+00> : vector<16x2048xf32>
    %143 = tpu.matmul %140, %142, %cst_43 {dimension_numbers = #tpu.dot_dimension_numbers<[1], [0], [0], [1], [0, 0, 1, 1], [], []>} : vector<16x32xbf16>, vector<32x2048xbf16>, vector<16x2048xf32> -> vector<16x2048xf32>
    %c0_44 = arith.constant 0 : index
    %c0_45 = arith.constant 0 : index
    %144 = vector.load %arg10[%c0_44, %c0_45] : memref<1x2048xf32, #tpu.memory_space<vmem>>, vector<1x2048xf32>
    %145 = vector.broadcast %144 : vector<1x2048xf32> to vector<16x2048xf32>
    %146 = arith.addf %143, %145 : vector<16x2048xf32>
    %cst_46 = arith.constant 0.000000e+00 : f32
    %147 = vector.broadcast %cst_46 : f32 to vector<16x2048xf32>
    %148 = arith.maximumf %146, %147 : vector<16x2048xf32>
    %149 = arith.truncf %148 : vector<16x2048xf32> to vector<16x2048xbf16>
    %c0_47 = arith.constant 0 : index
    %c0_48 = arith.constant 0 : index
    %150 = vector.load %arg11[%c0_47, %c0_48] : memref<2048x32xf32, #tpu.memory_space<vmem>>, vector<2048x32xf32>
    %151 = arith.truncf %150 : vector<2048x32xf32> to vector<2048x32xbf16>
    %cst_49 = arith.constant dense<0.000000e+00> : vector<16x32xf32>
    %152 = tpu.matmul %149, %151, %cst_49 {dimension_numbers = #tpu.dot_dimension_numbers<[1], [0], [0], [1], [0, 0, 1, 1], [], []>} : vector<16x2048xbf16>, vector<2048x32xbf16>, vector<16x32xf32> -> vector<16x32xf32>
    %c0_50 = arith.constant 0 : index
    %c0_51 = arith.constant 0 : index
    %153 = vector.load %arg12[%c0_50, %c0_51] : memref<1x32xf32, #tpu.memory_space<vmem>>, vector<1x32xf32>
    %154 = vector.broadcast %153 : vector<1x32xf32> to vector<16x32xf32>
    %155 = arith.addf %152, %154 : vector<16x32xf32>
    %156 = arith.addf %139, %155 : vector<16x32xf32>
    %cst_52 = arith.constant dense<0.000000e+00> : vector<16xf32>
    %157 = vector.multi_reduction <add>, %156, %cst_52 [1] : vector<16x32xf32> to vector<16xf32>
    %158 = vector.shape_cast %157 : vector<16xf32> to vector<16x1xf32>
    %cst_53 = arith.constant 3.200000e+01 : f32
    %159 = vector.broadcast %cst_53 : f32 to vector<16x1xf32>
    %160 = arith.divf %158, %159 : vector<16x1xf32>
    %161 = vector.broadcast %160 : vector<16x1xf32> to vector<16x32xf32>
    %162 = arith.subf %156, %161 : vector<16x32xf32>
    %163 = arith.mulf %162, %162 : vector<16x32xf32>
    %cst_54 = arith.constant dense<0.000000e+00> : vector<16xf32>
    %164 = vector.multi_reduction <add>, %163, %cst_54 [1] : vector<16x32xf32> to vector<16xf32>
    %165 = vector.shape_cast %164 : vector<16xf32> to vector<16x1xf32>
    %cst_55 = arith.constant 3.200000e+01 : f32
    %166 = vector.broadcast %cst_55 : f32 to vector<16x1xf32>
    %167 = arith.divf %165, %166 : vector<16x1xf32>
    %168 = vector.broadcast %160 : vector<16x1xf32> to vector<16x32xf32>
    %169 = arith.subf %156, %168 : vector<16x32xf32>
    %cst_56 = arith.constant 9.99999974E-6 : f32
    %170 = vector.broadcast %cst_56 : f32 to vector<16x1xf32>
    %171 = arith.addf %167, %170 : vector<16x1xf32>
    %172 = math.rsqrt %171 : vector<16x1xf32>
    %173 = vector.broadcast %172 : vector<16x1xf32> to vector<16x32xf32>
    %174 = arith.mulf %169, %173 : vector<16x32xf32>
    %c0_57 = arith.constant 0 : index
    %c0_58 = arith.constant 0 : index
    %175 = vector.load %arg13[%c0_57, %c0_58] : memref<1x32xf32, #tpu.memory_space<vmem>>, vector<1x32xf32>
    %176 = vector.broadcast %175 : vector<1x32xf32> to vector<16x32xf32>
    %177 = arith.mulf %174, %176 : vector<16x32xf32>
    %c0_59 = arith.constant 0 : index
    %c0_60 = arith.constant 0 : index
    %178 = vector.load %arg14[%c0_59, %c0_60] : memref<1x32xf32, #tpu.memory_space<vmem>>, vector<1x32xf32>
    %179 = vector.broadcast %178 : vector<1x32xf32> to vector<16x32xf32>
    %180 = arith.addf %177, %179 : vector<16x32xf32>
    %c0_61 = arith.constant 0 : index
    %c0_62 = arith.constant 0 : index
    %181 = vector.load %arg15[%c0_61, %c0_62] : memref<16x32xf32, #tpu.memory_space<vmem>>, vector<16x32xf32>
    tpu.vector_store %arg15[%c0_61, %c0_62], %180 {strides = array<i32>} : memref<16x32xf32, #tpu.memory_space<vmem>>, vector<16x32xf32>,
    %182 = vector.extract_strided_slice %180 {offsets = [0, 0], sizes = [8, 32], strides = [1, 1]} : vector<16x32xf32> to vector<8x32xf32>
    %cst_63 = arith.constant dense<0.000000e+00> : vector<32xf32>
    %183 = vector.multi_reduction <add>, %182, %cst_63 [0] : vector<8x32xf32> to vector<32xf32>
    %184 = vector.shape_cast %183 : vector<32xf32> to vector<1x32xf32>
    %185 = vector.extract_strided_slice %180 {offsets = [8, 0], sizes = [8, 32], strides = [1, 1]} : vector<16x32xf32> to vector<8x32xf32>
    %cst_64 = arith.constant dense<0.000000e+00> : vector<32xf32>
    %186 = vector.multi_reduction <add>, %185, %cst_64 [0] : vector<8x32xf32> to vector<32xf32>
    %187 = vector.shape_cast %186 : vector<32xf32> to vector<1x32xf32>
    %188 = tpu.concatenate %184, %187 in 0 : vector<1x32xf32>, vector<1x32xf32> -> vector<2x32xf32>
    %c0_65 = arith.constant 0 : index
    %c0_66 = arith.constant 0 : index
    %189 = vector.load %arg16[%c0_65, %c0_66] : memref<2x32xf32, #tpu.memory_space<vmem>>, vector<2x32xf32>
    tpu.vector_store %arg16[%c0_65, %c0_66], %188 {strides = array<i32>} : memref<2x32xf32, #tpu.memory_space<vmem>>, vector<2x32xf32>,
    return
  }
  func.func @transform_0(%arg0: i32) -> (i32, i32) {
    %c0_i32 = arith.constant 0 : i32
    %c0_i32_0 = arith.constant 0 : i32
    %c0_i32_1 = arith.constant 0 : i32
    return %c0_i32, %c0_i32_0 : i32, i32
  }
  func.func @transform_1(%arg0: i32) -> (i32, i32) {
    %c0_i32 = arith.constant 0 : i32
    %c0_i32_0 = arith.constant 0 : i32
    %c0_i32_1 = arith.constant 0 : i32
    return %c0_i32, %c0_i32_0 : i32, i32
  }
  func.func @transform_2(%arg0: i32) -> (i32, i32) {
    %c0_i32 = arith.constant 0 : i32
    %c0_i32_0 = arith.constant 0 : i32
    %c0_i32_1 = arith.constant 0 : i32
    return %c0_i32, %c0_i32_0 : i32, i32
  }
  func.func @transform_3(%arg0: i32) -> (i32, i32) {
    %c0_i32 = arith.constant 0 : i32
    %c0_i32_0 = arith.constant 0 : i32
    %c0_i32_1 = arith.constant 0 : i32
    return %c0_i32, %c0_i32_0 : i32, i32
  }
  func.func @transform_4(%arg0: i32) -> (i32, i32) {
    %c0_i32 = arith.constant 0 : i32
    %c0_i32_0 = arith.constant 0 : i32
    %c0_i32_1 = arith.constant 0 : i32
    return %c0_i32, %c0_i32_0 : i32, i32
  }
  func.func @transform_5(%arg0: i32) -> (i32, i32) {
    %c0_i32 = arith.constant 0 : i32
    %c0_i32_0 = arith.constant 0 : i32
    %c0_i32_1 = arith.constant 0 : i32
    return %c0_i32, %c0_i32_0 : i32, i32
  }
  func.func @transform_6(%arg0: i32) -> (i32, i32) {
    %c0_i32 = arith.constant 0 : i32
    %c0_i32_0 = arith.constant 0 : i32
    %c0_i32_1 = arith.constant 0 : i32
    return %c0_i32, %c0_i32_0 : i32, i32
  }
  func.func @transform_7(%arg0: i32) -> (i32, i32) {
    %c0_i32 = arith.constant 0 : i32
    %c0_i32_0 = arith.constant 0 : i32
    %c0_i32_1 = arith.constant 0 : i32
    return %c0_i32, %c0_i32_0 : i32, i32
  }
  func.func @transform_8(%arg0: i32) -> (i32, i32) {
    %c0_i32 = arith.constant 0 : i32
    %c0_i32_0 = arith.constant 0 : i32
    %c0_i32_1 = arith.constant 0 : i32
    return %c0_i32, %c0_i32_0 : i32, i32
  }
  func.func @transform_9(%arg0: i32) -> (i32, i32) {
    %c0_i32 = arith.constant 0 : i32
    %c0_i32_0 = arith.constant 0 : i32
    %c0_i32_1 = arith.constant 0 : i32
    return %c0_i32, %c0_i32_0 : i32, i32
  }
  func.func @transform_10(%arg0: i32) -> (i32, i32) {
    %c0_i32 = arith.constant 0 : i32
    %c0_i32_0 = arith.constant 0 : i32
    %c0_i32_1 = arith.constant 0 : i32
    return %c0_i32, %c0_i32_0 : i32, i32
  }
  func.func @transform_11(%arg0: i32) -> (i32, i32) {
    %c0_i32 = arith.constant 0 : i32
    %c0_i32_0 = arith.constant 0 : i32
    %c0_i32_1 = arith.constant 0 : i32
    return %c0_i32, %c0_i32_0 : i32, i32
  }
  func.func @transform_12(%arg0: i32) -> (i32, i32) {
    %c0_i32 = arith.constant 0 : i32
    %c0_i32_0 = arith.constant 0 : i32
    %c0_i32_1 = arith.constant 0 : i32
    return %c0_i32, %c0_i32_0 : i32, i32
  }
  func.func @transform_13(%arg0: i32) -> (i32, i32) {
    %c0_i32 = arith.constant 0 : i32
    %c0_i32_0 = arith.constant 0 : i32
    %c0_i32_1 = arith.constant 0 : i32
    return %c0_i32, %c0_i32_0 : i32, i32
  }
  func.func @transform_14(%arg0: i32) -> (i32, i32) {
    %c0_i32 = arith.constant 0 : i32
    %c0_i32_0 = arith.constant 0 : i32
    %c0_i32_1 = arith.constant 0 : i32
    return %c0_i32, %c0_i32_0 : i32, i32
  }
  func.func @transform_15(%arg0: i32) -> (i32, i32) {
    %c0_i32 = arith.constant 0 : i32
    %c0_i32_0 = arith.constant 0 : i32
    %c0_i32_1 = arith.constant 0 : i32
    return %c0_i32, %c0_i32_0 : i32, i32
  }
}

</mosaic_0001>

<bundles_post_ra>
// kernel: tpu_custom_call.1
= control target key start
LH: loop header
LB: loop body
LE: loop exit
PB: predicated region body
PF: predicated region fallthrough
CT: control target
= control target key end

     0   :  { %21 = vsyncpa [#allocation3], 0  ;;  %s2956_s0 = inlined_call_operand.vmem [shape: f32[16,32], index: 0, kind: input, shape index: {}]   ;;  %s2957_s1 = inlined_call_operand.vmem [shape: f32[2,8], index: 1, kind: input, shape index: {}]   ;;  %s2958_s2 = inlined_call_operand.vmem [shape: f32[32,96], index: 2, kind: input, shape index: {}]   ;;  %s2959_s3 = inlined_call_operand.vmem [shape: f32[1,96], index: 3, kind: input, shape index: {}]   ;;  %s2960_s4 = inlined_call_operand.vmem [shape: f32[32,32], index: 4, kind: input, shape index: {}]   ;;  %s2961_s5 = inlined_call_operand.vmem [shape: f32[1,32], index: 5, kind: input, shape index: {}]   ;;  %s2962_s6 = inlined_call_operand.vmem [shape: f32[1,32], index: 6, kind: input, shape index: {}]   ;;  %s2963_s7 = inlined_call_operand.vmem [shape: f32[1,32], index: 7, kind: input, shape index: {}]   ;;  %s2964_s8 = inlined_call_operand.vmem [shape: f32[32,2048], index: 8, kind: input, shape index: {}]   ;;  %s2965_s9 = inlined_call_operand.vmem [shape: f32[1,2048], index: 9, kind: input, shape index: {}]   ;;  %s2966_s10 = inlined_call_operand.vmem [shape: f32[2048,32], index: 10, kind: input, shape index: {}]   ;;  %s2967_s11 = inlined_call_operand.vmem [shape: f32[1,32], index: 11, kind: input, shape index: {}]   ;;  %s2968_s12 = inlined_call_operand.vmem [shape: f32[1,32], index: 12, kind: input, shape index: {}]   ;;  %s2969_s13 = inlined_call_operand.vmem [shape: f32[1,32], index: 13, kind: input, shape index: {}]   ;;  %s2970_s14 = inlined_call_operand.hbm [shape: f32[16,32], index: 14, kind: output, shape index: {0}]   ;;  %s2971_s15 = inlined_call_operand.hbm [shape: f32[2,32], index: 15, kind: output, shape index: {1}]  }
   0x1   :  { %v58_v0 = vld [vmem:[%s2958_s2 + $0x10] sm:$0xff]  ;;  %v59_v1 = vld [vmem:[%s2958_s2 + $0x18] sm:$0xff]  ;;  %v56_v2 = vld [vmem:[%s2958_s2] sm:$0xff] }
   0x2   :  { %v61_v3 = vpack.c.bf16 %v59_v1, %v58_v0  ;;  %v57_v4 = vld [vmem:[%s2958_s2 + $0x8] sm:$0xff]  ;;  %v1789_v5 = vld [vmem:[%s2956_s0] sm:$0xff] }
   0x3   :  { %v1794_v6 = vld [vmem:[%s2956_s0 + $0x8] sm:$0xff]  ;;  %v60_v7 = vpack.c.bf16 %v57_v4, %v56_v2 }
   0x4   :  { %76 = vmatpush.bf16.msra.mxu0 %v61_v3 }
   0x5   :  { %22 = vsyncpa [#allocation5], 0  ;;  %v55_v8 = vpack.c.bf16 %v1794_v6, %v1789_v5  ;;  %vm66_vm0 = vcmask 261120   ;;  %v1598_v9 = vld [vmem:[%s2959_s3] ss:$0 sm:$0xff]  ;;  %s1683_s0 = smov 112  }
   0x6   :  { %s1684_s16 = smov 96   ;;  %s1685_s17 = smov 80   ;;  %vm88_vm1 = vcmask 130048   ;;  %v54_v26 = vld [vmem:[%s2957_s1] sm:$0x3]  ;;  %vm111_vm2 = vcmask 64512  }
   0x7   :  { %v233_v27 = vperm.slane %v54_v26, 1  ;;  %v109_v31 = vperm.slane %v54_v26, 0  ;;  %s1686_s1 = smov 64   ;;  %s1687_s19 = smov 48   ;;  %vm129_vm3 = vcmask 1043456  }
   0x8   :  { %77 = vmatpush.bf16.msra.mxu0 %v60_v7  ;;  %s1688_s20 = smov 16   ;;  %s1692_s21 = smov 8  }
   0x9   :  { %s1542_s23 = sshll.u32 %s2971_s15, 4  ;;  %s1543_s23 = int_to_ptr.hbm [resolvable:$true] %s1542_s23 }
   0xb   :  { %1556 = vmatmul.msk.bf16.vlgmr.msra.gmra.mxu0 %vm66_vm0, %v55_v8 }
  0x88   :  { %v79_v10 = vpop.f32.mrf.mxu0 }
  0x89   :  { %v80_v11 = vadd.f32 %v1598_v9, %v79_v10 }
  0x8b   :  { %v1802_v12 = vpack.c.bf16 %v80_v11, %v80_v11 }
  0x8d   :  { %146 = vrot.lane.b32.xlu1 %v1802_v12, %s1683_s0  ;;  %86 = vrot.lane.b32.xlu0 %v1802_v12, %s1684_s16 }
  0x90   :  { %v81_v13 = vpop.f32.mrf.mxu0 }
  0x91   :  { %v82_v14 = vadd.f32 %v1598_v9, %v81_v13 }
  0x93   :  { %v209_v15 = vpack.c.bf16 %v82_v14, %v82_v14 }
  0x95   :  { %268 = vrot.lane.b32.xlu2 %v209_v15, %s1683_s0  ;;  %270 = vrot.lane.b32.xlu1 %v209_v15, %s1685_s17 }
  0x96   :  { %148 = vrot.lane.b32.xlu0 %v1802_v12, %s1685_s17 }
  0x9d   :  { %211 = vrot.lane.b32.xlu2 %v209_v15, %s1684_s16 }
  0xef   :  { %v269_v16 = vpop.permute.xlu2 %268 }
  0xf7   :  { %v212_v17 = vpop.permute.xlu2 %211 }
  0xf8   :  { %v217_v18 = vsel %vm88_vm1, %v212_v17, 0 }
  0xf9   :  { %226 = vmatpush.bf16.xpose.msrb.mxu0 %v217_v18 }
  0xff   :  { %v147_v19 = vpop.permute.xlu1 %146  ;;  %v87_v20 = vpop.permute.xlu0 %86 }
 0x100   :  { %1561 = vmatmul.msk.bf16.vlgmr.msrb.gmra.mxu0 %vm88_vm1, %v209_v15  ;;  %v93_v21 = vsel %vm88_vm1, %v87_v20, 0 }
 0x101   :  { %102 = vmatpush.bf16.xpose.msra.mxu1 %v93_v21 }
 0x107   :  { %v271_v22 = vpop.permute.xlu1 %270 }
 0x108   :  { %v149_v23 = vpop.permute.xlu0 %148  ;;  %1557 = vmatmul.msk.bf16.vlgmr.msra.gmra.mxu1 %vm88_vm1, %v1802_v12  ;;  %v276_v24 = vsel %vm88_vm1, %v271_v22, 0 }
 0x109   :  { %v154_v25 = vsel %vm88_vm1, %v149_v23, 0 }
 0x10a   :  { %163 = vmatpush.bf16.xpose.msra.mxu3 %v154_v25 }
 0x111   :  { %1559 = vmatmul.msk.bf16.vlgmr.msra.gmra.mxu3 %vm88_vm1, %v147_v19 }
 0x112   :  { %285 = vmatpush.bf16.xpose.msrb.mxu3 %v276_v24 }
 0x121   :  { %1563 = vmatmul.msk.bf16.vlgmr.msrb.gmra.mxu3 %vm88_vm1, %v269_v16 }
 0x17d   :  { %v228_v28 = vpop.f32.mrf.mxu0 }
 0x17e   :  { %v232_v29 = vmul.f32 0.25, %v228_v28 }
 0x180   :  { %v1819_v30 = vadd.f32 %v233_v27, %v232_v29 }
 0x182   :  { %v235_v0 = vsel %vm111_vm2, %v1819_v30, -inf }
 0x185   :  { %v104_v32 = vpop.f32.mrf.mxu1  ;;  %v230_v33 = vpop.f32.mrf.mxu0 }
 0x186   :  { %v108_v34 = vmul.f32 0.25, %v104_v32 }
 0x188   :  { %v110_v35 = vadd.f32 %v109_v31, %v108_v34 }
 0x18a   :  { %v112_v36 = vsel %vm111_vm2, %v110_v35, -inf }
 0x18b   :  { %113 = vmax.xlane.f32.xlu0 %v112_v36 }
 0x18d   :  { %v106_v37 = vpop.f32.mrf.mxu1 }
 0x194   :  { %v165_v38 = vpop.f32.mrf.mxu3 }
 0x195   :  { %v169_v39 = vmul.f32 0.25, %v165_v38  ;;  %v334_v38 = vld [vmem:[%s2960_s4 + $0x10] sm:$0xff] }
 0x197   :  { %v170_v40 = vadd.f32 %v169_v39, %v109_v31  ;;  %v335_v39 = vld [vmem:[%s2960_s4 + $0x18] sm:$0xff] }
 0x199   :  { %v171_v41 = vsel %vm111_vm2, %v170_v40, -inf }
 0x19a   :  { %172 = vmax.xlane.f32.xlu1 %v171_v41  ;;  %v332_v41 = vld [vmem:[%s2960_s4] sm:$0xff] }
 0x19c   :  { %v167_v42 = vpop.f32.mrf.mxu3 }
 0x19d   :  { %v333_v42 = vld [vmem:[%s2960_s4 + $0x8] sm:$0xff] }
 0x19f   :  { %124 = vrot.lane.b32.xlu0 %v1802_v12, %s1686_s1 }
 0x1a4   :  { %v287_v43 = vpop.f32.mrf.mxu3 }
 0x1a5   :  { %v291_v44 = vmul.f32 0.25, %v287_v43  ;;  %v336_v43 = vpack.c.bf16 %v333_v42, %v332_v41  ;;  %v461_v42 = vld [vmem:[%s2964_s8 + $0x120] sm:$0xff] }
 0x1a7   :  { %305 = vrot.lane.b32.xlu0 %v209_v15, %s1687_s19  ;;  %v292_v45 = vadd.f32 %v291_v44, %v233_v27 }
 0x1a9   :  { %v293_v46 = vsel %vm111_vm2, %v292_v45, -inf }
 0x1aa   :  { %294 = vmax.xlane.f32.xlu2 %v293_v46 }
 0x1ac   :  { %v289_v47 = vpop.f32.mrf.mxu3 }
 0x1af   :  { %247 = vrot.lane.b32.xlu0 %v209_v15, %s1686_s1 }
 0x1fe   :  { %v114_v48 = vpop.xlane.xlu0 %113 }
 0x1ff   :  { %v115_v49 = vsub.f32 %v110_v35, %v114_v48 }
 0x201   :  { %v116_v50 = vmul.f32 1.442695, %v115_v49 }
 0x203   :  { %1605 = vpow2.f32 %v116_v50 }
 0x209   :  { %v1606_v51 = vpop.eup %1605 }
 0x20a   :  { %v118_v52 = vsel %vm111_vm2, %v1606_v51, 0.0 }
 0x20b   :  { %119 = vadd.xlane.f32.xlu2 %v118_v52  ;;  %v1599_v52 = vld [vmem:[%s2961_s5] ss:$0 sm:$0xff] }
 0x20d   :  { %v173_v53 = vpop.xlane.xlu1 %172 }
 0x20e   :  { %v174_v54 = vsub.f32 %v170_v40, %v173_v53  ;;  %v337_v40 = vpack.c.bf16 %v335_v39, %v334_v38  ;;  %v428_v38 = vld [vmem:[%s2964_s8 + $0x18] sm:$0xff] }
 0x20f   :  { %v444_v39 = vld [vmem:[%s2964_s8 + $0x98] sm:$0xff] }
 0x210   :  { %v175_v55 = vmul.f32 1.442695, %v174_v54  ;;  %351 = vmatpush.bf16.msra.mxu0 %v337_v40  ;;  %v492_v40 = vpack.c.bf16 %v444_v39, %v428_v38  ;;  %v433_v38 = vld [vmem:[%s2964_s8 + $0x40] sm:$0xff] }
 0x211   :  { %v125_v56 = vpop.permute.xlu0 %124  ;;  %v449_v39 = vld [vmem:[%s2964_s8 + $0xc0] sm:$0xff] }
 0x212   :  { %1607 = vpow2.f32 %v175_v55  ;;  %v131_v57 = vsel %vm129_vm3, %v125_v56, 0 }
 0x213   :  { %140 = vmatpush.bf16.msra.mxu2 %v131_v57 }
 0x214   :  { %352 = vmatpush.bf16.msra.mxu0 %v336_v43  ;;  %v477_v43 = vld [vmem:[%s2964_s8 + $0x1a0] sm:$0xff] }
 0x218   :  { %v1608_v58 = vpop.eup %1607 }
 0x219   :  { %v177_v59 = vsel %vm111_vm2, %v1608_v58, 0.0  ;;  %v306_v60 = vpop.permute.xlu0 %305 }
 0x21a   :  { %178 = vadd.xlane.f32.xlu1 %v177_v59  ;;  %v311_v14 = vsel %vm129_vm3, %v306_v60, 0 }
 0x21d   :  { %v295_v61 = vpop.xlane.xlu2 %294 }
 0x21e   :  { %v296_v62 = vsub.f32 %v292_v45, %v295_v61  ;;  %v1689_v61 = vmov 32.0  }
 0x220   :  { %v297_v63 = vmul.f32 1.442695, %v296_v62 }
 0x221   :  { %v248_v1 = vpop.permute.xlu0 %247 }
 0x222   :  { %1609 = vpow2.f32 %v297_v63  ;;  %236 = vmax.xlane.f32.xlu1 %v235_v0  ;;  %v253_v2 = vsel %vm129_vm3, %v248_v1, 0 }
 0x223   :  { %183 = vrot.lane.b32.xlu2 %v1802_v12, %s1687_s19  ;;  %262 = vmatpush.bf16.msrb.mxu1 %v253_v2 }
 0x228   :  { %v1610_v3 = vpop.eup %1609 }
 0x229   :  { %v299_v4 = vsel %vm111_vm2, %v1610_v3, 0.0 }
 0x22a   :  { %300 = vadd.xlane.f32.xlu1 %v299_v4 }
 0x27e   :  { %v120_v7 = vpop.xlane.xlu2 %119 }
 0x27f   :  { %1611 = vrcp.f32 %v120_v7 }
 0x285   :  { %v1612_v8 = vpop.eup %1611 }
 0x286   :  { %v184_v9 = vpop.permute.xlu2 %183  ;;  %v122_v10 = vmul.f32 %v1612_v8, %v1606_v51 }
 0x287   :  { %v189_v11 = vsel %vm129_vm3, %v184_v9, 0 }
 0x288   :  { %198 = vmatpush.bf16.msrb.mxu2 %v189_v11  ;;  %v123_v13 = vpack.c.bf16 %v122_v10, %v122_v10 }
 0x28a   :  { %1558 = vmatmul.msk.bf16.vlgmr.msra.gmra.mxu2 %vm111_vm2, %v123_v13 }
 0x28c   :  { %320 = vmatpush.bf16.msra.mxu2 %v311_v14 }
 0x28d   :  { %v179_v12 = vpop.xlane.xlu1 %178 }
 0x28e   :  { %1613 = vrcp.f32 %v179_v12  ;;  %v457_v12 = vld [vmem:[%s2964_s8 + $0x100] sm:$0xff] }
 0x294   :  { %v1614_v15 = vpop.eup %1613 }
 0x295   :  { %v181_v16 = vmul.f32 %v1614_v15, %v1608_v58  ;;  %v237_v17 = vpop.xlane.xlu1 %236  ;;  %v473_v15 = vld [vmem:[%s2964_s8 + $0x180] sm:$0xff] }
 0x296   :  { %v238_v18 = vsub.f32 %v1819_v30, %v237_v17  ;;  %v505_v17 = vpack.c.bf16 %v473_v15, %v457_v12 }
 0x297   :  { %v182_v20 = vpack.c.bf16 %v181_v16, %v181_v16  ;;  %v458_v16 = vld [vmem:[%s2964_s8 + $0x108] sm:$0xff] }
 0x298   :  { %v239_v19 = vmul.f32 1.442695, %v238_v18  ;;  %v474_v18 = vld [vmem:[%s2964_s8 + $0x188] sm:$0xff]  ;;  %566 = vmatpush.bf16.msra.mxu1 %v505_v17 }
 0x29a   :  { %1615 = vpow2.f32 %v239_v19  ;;  %1560 = vmatmul.msk.bf16.vlgmr.msrb.gmra.mxu2 %vm111_vm2, %v182_v20  ;;  %v459_v19 = vld [vmem:[%s2964_s8 + $0x110] sm:$0xff] }
 0x29b   :  { %v475_v20 = vld [vmem:[%s2964_s8 + $0x190] sm:$0xff] }
 0x29d   :  { %v301_v21 = vpop.xlane.xlu1 %300 }
 0x29e   :  { %1617 = vrcp.f32 %v301_v21  ;;  %v506_v21 = vpack.c.bf16 %v474_v18, %v458_v16 }
 0x2a0   :  { %v1616_v22 = vpop.eup %1615  ;;  %580 = vmatpush.bf16.msra.mxu3 %v506_v21 }
 0x2a1   :  { %v241_v23 = vsel %vm111_vm2, %v1616_v22, 0.0 }
 0x2a2   :  { %242 = vadd.xlane.f32.xlu1 %v241_v23  ;;  %v460_v23 = vld [vmem:[%s2964_s8 + $0x118] sm:$0xff] }
 0x2a4   :  { %v1618_v24 = vpop.eup %1617 }
 0x2a5   :  { %v303_v25 = vmul.f32 %v1618_v24, %v1610_v3  ;;  %v476_v24 = vld [vmem:[%s2964_s8 + $0x198] sm:$0xff] }
 0x2a7   :  { %v304_v26 = vpack.c.bf16 %v303_v25, %v303_v25 }
 0x2aa   :  { %1564 = vmatmul.msk.bf16.vlgmr.msra.gmra.mxu2 %vm111_vm2, %v304_v26  ;;  %v508_v26 = vpack.c.bf16 %v476_v24, %v460_v23  ;;  %v1601_v23 = vld [vmem:[%s2963_s7] ss:$0 sm:$0xff] }
 0x2ac   :  { %608 = vmatpush.bf16.msrb.mxu0 %v508_v26 }
 0x2b0   :  { %609 = vmatpush.bf16.msrb.mxu0 %v492_v40 }
 0x30d   :  { %v142_v27 = vpop.f32.mrf.mxu2 }
 0x315   :  { %v243_v28 = vpop.xlane.xlu1 %242  ;;  %v144_v29 = vpop.f32.mrf.mxu2 }
 0x316   :  { %1619 = vrcp.f32 %v243_v28  ;;  %v425_v28 = vld [vmem:[%s2964_s8] sm:$0xff] }
 0x317   :  { %1621 = vrcp.f32 %v1689_v61  ;;  %v441_v29 = vld [vmem:[%s2964_s8 + $0x80] sm:$0xff] }
 0x31c   :  { %v1620_v30 = vpop.eup %1619 }
 0x31d   :  { %v245_v31 = vmul.f32 %v1620_v30, %v1616_v22  ;;  %v200_v32 = vpop.f32.mrf.mxu2  ;;  %v1622_v62 = vpop.eup %1621  ;;  %v507_v22 = vpack.c.bf16 %v475_v20, %v459_v19  ;;  %v426_v30 = vld [vmem:[%s2964_s8 + $0x8] sm:$0xff]  ;;  %v1600_v19 = vld [vmem:[%s2962_s6] ss:$0 sm:$0xff] }
 0x31e   :  { %v368_v63 = vmul.f32 32.0, %v1622_v62  ;;  %vm372_vm4 = vweird.f32 %v1622_v62 }
 0x31f   :  { %v246_v33 = vpack.c.bf16 %v245_v31, %v245_v31  ;;  %594 = vmatpush.bf16.msrb.mxu2 %v507_v22  ;;  %v489_v31 = vpack.c.bf16 %v441_v29, %v425_v28  ;;  %v466_v28 = vld [vmem:[%s2964_s8 + $0x148] sm:$0xff] }
 0x320   :  { %v369_v0 = vsub.f32 1.0, %v368_v63  ;;  %v482_v29 = vld [vmem:[%s2964_s8 + $0x1c8] sm:$0xff] }
 0x321   :  { %1562 = vmatmul.msk.bf16.vlgmr.msrb.gmra.mxu1 %vm111_vm2, %v246_v33  ;;  %v427_v33 = vld [vmem:[%s2964_s8 + $0x10] sm:$0xff]  ;;  %vm1518_vm2 = vcmask 1040384  }
 0x322   :  { %v370_v1 = vmul.f32 %v1622_v62, %v369_v0  ;;  %567 = vmatpush.bf16.msra.mxu1 %v489_v31  ;;  %v431_v0 = vld [vmem:[%s2964_s8 + $0x30] sm:$0xff] }
 0x324   :  { %v371_v2 = vadd.f32 %v1622_v62, %v370_v1  ;;  %v447_v1 = vld [vmem:[%s2964_s8 + $0xb0] sm:$0xff] }
 0x325   :  { %v202_v34 = vpop.f32.mrf.mxu2 }
 0x326   :  { %v1865_v3 = vsel %vm372_vm4, %v1622_v62, %v371_v2  ;;  %v443_v34 = vld [vmem:[%s2964_s8 + $0x90] sm:$0xff]  ;;  %v432_v2 = vld [vmem:[%s2964_s8 + $0x38] sm:$0xff] }
 0x32d   :  { %v322_v35 = vpop.f32.mrf.mxu2 }
 0x32e   :  { %v1593_v36 = vpack.i.bf16 %v322_v35, %v200_v32  ;;  %v442_v32 = vld [vmem:[%s2964_s8 + $0x88] sm:$0xff] }
 0x330   :  { %1594 = vrot.lane.b32.xlu2 %v1593_v36, %s1688_s20  ;;  %v490_v36 = vpack.c.bf16 %v442_v32, %v426_v30  ;;  %v483_v32 = vld [vmem:[%s2964_s8 + $0x1d0] sm:$0xff]  ;;  %s1691_s20 = smov 128  }
 0x332   :  { %581 = vmatpush.bf16.msra.mxu3 %v490_v36 }
 0x335   :  { %v324_v37 = vpop.f32.mrf.mxu2 }
 0x336   :  { %v491_v37 = vpack.c.bf16 %v443_v34, %v427_v33  ;;  %v468_v33 = vld [vmem:[%s2964_s8 + $0x158] sm:$0xff] }
 0x337   :  { %v484_v34 = vld [vmem:[%s2964_s8 + $0x1d8] sm:$0xff] }
 0x338   :  { %595 = vmatpush.bf16.msrb.mxu2 %v491_v37  ;;  %v514_v37 = vpack.c.bf16 %v482_v29, %v466_v28 }
 0x38a   :  { %v1595_v44 = vpop.permute.xlu2 %1594 }
 0x38b   :  { %v1596_v45 = vunpack.i.l.bf16 %v1595_v44  ;;  %v1597_v46 = vunpack.i.h.bf16 %v1595_v44  ;;  %v462_v44 = vld [vmem:[%s2964_s8 + $0x128] sm:$0xff] }
 0x38d   :  { %v208_v48 = vsel %vm88_vm1, %v142_v27, %v1596_v45 }
 0x39e   :  { %v264_v47 = vpop.f32.mrf.mxu1 }
 0x39f   :  { %v330_v49 = vsel %vm88_vm1, %v264_v47, %v1597_v46  ;;  %v509_v46 = vpack.c.bf16 %v477_v43, %v461_v42  ;;  %v478_v47 = vld [vmem:[%s2964_s8 + $0x1a8] sm:$0xff] }
 0x3a0   :  { %v331_v50 = vpack.c.bf16 %v330_v49, %v208_v48  ;;  %v463_v48 = vld [vmem:[%s2964_s8 + $0x130] sm:$0xff]  ;;  %v434_v42 = vld [vmem:[%s2964_s8 + $0x48] sm:$0xff] }
 0x3a1   :  { %v479_v49 = vld [vmem:[%s2964_s8 + $0x1b0] sm:$0xff]  ;;  %622 = vmatpush.bf16.msrb.mxu1 %v509_v46  ;;  %v450_v43 = vld [vmem:[%s2964_s8 + $0xc8] sm:$0xff]  ;;  %v436_v46 = vld [vmem:[%s2964_s8 + $0x58] sm:$0xff] }
 0x3a2   :  { %1565 = vmatmul.msk.bf16.vlgmr.msra.gmra.mxu0 %vm66_vm0, %v331_v50  ;;  %v510_v50 = vpack.c.bf16 %v478_v47, %v462_v44  ;;  %v435_v44 = vld [vmem:[%s2964_s8 + $0x50] sm:$0xff]  ;;  %v452_v47 = vld [vmem:[%s2964_s8 + $0xd8] sm:$0xff] }
 0x3a4   :  { %636 = vmatpush.bf16.msrb.mxu3 %v510_v50 }
 0x3a6   :  { %v266_v51 = vpop.f32.mrf.mxu1 }
 0x3a7   :  { %v511_v51 = vpack.c.bf16 %v479_v49, %v463_v48  ;;  %v497_v48 = vpack.c.bf16 %v449_v39, %v433_v38  ;;  %v498_v49 = vpack.c.bf16 %v450_v43, %v434_v42  ;;  %v842_v38 = vld [vmem:[%s2966_s10 + $0x50] sm:$0xff]  ;;  %v843_v39 = vld [vmem:[%s2966_s10 + $0x58] sm:$0xff] }
 0x3a9   :  { %650 = vmatpush.bf16.msra.mxu2 %v511_v51  ;;  %v500_v51 = vpack.c.bf16 %v452_v47, %v436_v46  ;;  %v874_v46 = vld [vmem:[%s2966_s10 + $0x150] sm:$0xff]  ;;  %v875_v47 = vld [vmem:[%s2966_s10 + $0x158] sm:$0xff] }
 0x41f   :  { %v354_v53 = vpop.f32.mrf.mxu0 }
 0x420   :  { %v355_v54 = vadd.f32 %v1599_v52, %v354_v53  ;;  %v480_v53 = vld [vmem:[%s2964_s8 + $0x1b8] sm:$0xff] }
 0x422   :  { %v359_v55 = vadd.f32 %v355_v54, %v1789_v5  ;;  %v429_v54 = vld [vmem:[%s2964_s8 + $0x20] sm:$0xff] }
 0x424   :  { %v361_v56 = vsel %vm66_vm0, %v359_v55, 0.0 }
 0x425   :  { %362 = vadd.xlane.f32.xlu1 %v361_v56 }
 0x427   :  { %v356_v57 = vpop.f32.mrf.mxu0 }
 0x428   :  { %v357_v58 = vadd.f32 %v1599_v52, %v356_v57  ;;  %v464_v52 = vld [vmem:[%s2964_s8 + $0x138] sm:$0xff] }
 0x429   :  { %v512_v57 = vpack.c.bf16 %v480_v53, %v464_v52  ;;  %v469_v52 = vld [vmem:[%s2964_s8 + $0x160] sm:$0xff] }
 0x42a   :  { %v360_v59 = vadd.f32 %v357_v58, %v1794_v6  ;;  %v445_v58 = vld [vmem:[%s2964_s8 + $0xa0] sm:$0xff] }
 0x42b   :  { %v493_v62 = vpack.c.bf16 %v445_v58, %v429_v54  ;;  %664 = vmatpush.bf16.msra.mxu0 %v512_v57  ;;  %v485_v53 = vld [vmem:[%s2964_s8 + $0x1e0] sm:$0xff]  ;;  %v470_v54 = vld [vmem:[%s2964_s8 + $0x168] sm:$0xff]  ;;  %v487_v57 = vld [vmem:[%s2964_s8 + $0x1f0] sm:$0xff] }
 0x42c   :  { %v364_v60 = vsel %vm66_vm0, %v360_v59, 0.0  ;;  %v472_v58 = vld [vmem:[%s2964_s8 + $0x178] sm:$0xff] }
 0x42d   :  { %365 = vadd.xlane.f32.xlu0 %v364_v60  ;;  %v446_v60 = vld [vmem:[%s2964_s8 + $0xa8] sm:$0xff]  ;;  %623 = vmatpush.bf16.msrb.mxu1 %v493_v62  ;;  %v437_v62 = vld [vmem:[%s2964_s8 + $0x60] sm:$0xff] }
 0x498   :  { %v363_v5 = vpop.xlane.xlu1 %362 }
 0x499   :  { %v374_v4 = vmul.f32 %v1865_v3, %v363_v5  ;;  %v495_v5 = vpack.c.bf16 %v447_v1, %v431_v0 }
 0x49b   :  { %v1868_v7 = vsub.f32 %v359_v55, %v374_v4  ;;  %v448_v4 = vld [vmem:[%s2964_s8 + $0xb8] sm:$0xff]  ;;  %651 = vmatpush.bf16.msra.mxu2 %v495_v5  ;;  %v454_v5 = vld [vmem:[%s2964_s8 + $0xe8] sm:$0xff] }
 0x49d   :  { %v378_v6 = vmul.f32 %v1868_v7, %v1868_v7 }
 0x49f   :  { %v380_v8 = vsel %vm66_vm0, %v378_v6, 0.0 }
 0x4a0   :  { %v366_v9 = vpop.xlane.xlu0 %365  ;;  %381 = vadd.xlane.f32.xlu2 %v380_v8  ;;  %v496_v8 = vpack.c.bf16 %v448_v4, %v432_v2  ;;  %v438_v2 = vld [vmem:[%s2964_s8 + $0x68] sm:$0xff]  ;;  %v439_v4 = vld [vmem:[%s2964_s8 + $0x70] sm:$0xff] }
 0x4a1   :  { %v375_v10 = vmul.f32 %v1865_v3, %v366_v9 }
 0x4a2   :  { %665 = vmatpush.bf16.msra.mxu0 %v496_v8  ;;  %v440_v8 = vld [vmem:[%s2964_s8 + $0x78] sm:$0xff] }
 0x4a3   :  { %v1874_v11 = vsub.f32 %v360_v59, %v375_v10  ;;  %v430_v59 = vld [vmem:[%s2964_s8 + $0x28] sm:$0xff] }
 0x4a4   :  { %v494_v63 = vpack.c.bf16 %v446_v60, %v430_v59  ;;  %v488_v59 = vld [vmem:[%s2964_s8 + $0x1f8] sm:$0xff]  ;;  %v517_v60 = vpack.c.bf16 %v485_v53, %v469_v52  ;;  %v888_v52 = vld [vmem:[%s2966_s10 + $0x1c0] sm:$0xff]  ;;  %v889_v53 = vld [vmem:[%s2966_s10 + $0x1c8] sm:$0xff] }
 0x4a5   :  { %v379_v13 = vmul.f32 %v1874_v11, %v1874_v11  ;;  %v520_v1 = vpack.c.bf16 %v488_v59, %v472_v58  ;;  %v872_v58 = vld [vmem:[%s2966_s10 + $0x140] sm:$0xff]  ;;  %v873_v59 = vld [vmem:[%s2966_s10 + $0x148] sm:$0xff] }
 0x4a6   :  { %637 = vmatpush.bf16.msrb.mxu3 %v494_v63  ;;  %v453_v63 = vld [vmem:[%s2964_s8 + $0xe0] sm:$0xff] }
 0x4a7   :  { %v383_v14 = vsel %vm66_vm0, %v379_v13, 0.0 }
 0x4a8   :  { %384 = vadd.xlane.f32.xlu1 %v383_v14 }
 0x513   :  { %v382_v25 = vpop.xlane.xlu2 %381 }
 0x514   :  { %v386_v27 = vmul.f32 %v382_v25, %v1865_v3 }
 0x516   :  { %v388_v35 = vadd.f32 1e-05, %v386_v27  ;;  %v465_v27 = vld [vmem:[%s2964_s8 + $0x140] sm:$0xff] }
 0x518   :  { %1623 = vrsqrt.f32 %v388_v35  ;;  %vm396_vm6 = vweird.f32 %v388_v35 }
 0x51b   :  { %v385_v41 = vpop.xlane.xlu1 %384 }
 0x51c   :  { %v387_v45 = vmul.f32 %v385_v41, %v1865_v3  ;;  %v516_v41 = vpack.c.bf16 %v484_v34, %v468_v33  ;;  %v876_v33 = vld [vmem:[%s2966_s10 + $0x160] sm:$0xff]  ;;  %v877_v34 = vld [vmem:[%s2966_s10 + $0x168] sm:$0xff] }
 0x51d   :  { %v1110_v43 = vpack.c.bf16 %v877_v34, %v876_v33  ;;  %v867_v33 = vld [vmem:[%s2966_s10 + $0x118] sm:$0xff]  ;;  %v832_v34 = vld [vmem:[%s2966_s10] sm:$0xff] }
 0x51e   :  { %v1624_v55 = vpop.eup %1623  ;;  %v389_v56 = vadd.f32 1e-05, %v387_v45  ;;  %v451_v45 = vld [vmem:[%s2964_s8 + $0xd0] sm:$0xff] }
 0x51f   :  { %v391_v61 = vmul.f32 %v1624_v55, %v388_v35  ;;  %vm397_vm5 = vweird.f32 %v1624_v55  ;;  %v499_v50 = vpack.c.bf16 %v451_v45, %v435_v44  ;;  %v858_v44 = vld [vmem:[%s2966_s10 + $0xd0] sm:$0xff]  ;;  %v859_v45 = vld [vmem:[%s2966_s10 + $0xd8] sm:$0xff] }
 0x520   :  { %1625 = vrsqrt.f32 %v389_v56  ;;  %vm398_vm7 = vmor %vm396_vm6, %vm397_vm5  ;;  %vm406_vm9 = vweird.f32 %v389_v56 }
 0x521   :  { %v392_v6 = vmul.f32 %v1624_v55, %v391_v61 }
 0x523   :  { %v393_v9 = vmul.f32 0.5, %v392_v6  ;;  %v455_v6 = vld [vmem:[%s2964_s8 + $0xf0] sm:$0xff] }
 0x525   :  { %v394_v10 = vsub.f32 1.5, %v393_v9  ;;  %v456_v9 = vld [vmem:[%s2964_s8 + $0xf8] sm:$0xff] }
 0x526   :  { %v1626_v13 = vpop.eup %1625 }
 0x527   :  { %v395_v14 = vmul.f32 %v1624_v55, %v394_v10  ;;  %v401_v12 = vmul.f32 %v1626_v13, %v389_v56  ;;  %vm407_vm8 = vweird.f32 %v1626_v13  ;;  %v471_v56 = vld [vmem:[%s2964_s8 + $0x170] sm:$0xff]  ;;  %v501_v10 = vpack.c.bf16 %v453_v63, %v437_v62  ;;  %v839_v63 = vld [vmem:[%s2966_s10 + $0x38] sm:$0xff] }
 0x528   :  { %vm408_vm10 = vmor %vm406_vm9, %vm407_vm8  ;;  %v519_v0 = vpack.c.bf16 %v487_v57, %v471_v56  ;;  %v856_v56 = vld [vmem:[%s2966_s10 + $0xc0] sm:$0xff]  ;;  %v857_v57 = vld [vmem:[%s2966_s10 + $0xc8] sm:$0xff] }
 0x529   :  { %v402_v15 = vmul.f32 %v1626_v13, %v401_v12  ;;  %v399_v16 = vsel %vm398_vm7, %v1624_v55, %v395_v14  ;;  %v486_v55 = vld [vmem:[%s2964_s8 + $0x1e8] sm:$0xff]  ;;  %v503_v14 = vpack.c.bf16 %v455_v6, %v439_v4  ;;  %v504_v12 = vpack.c.bf16 %v456_v9, %v440_v8  ;;  %v838_v62 = vld [vmem:[%s2966_s10 + $0x30] sm:$0xff]  ;;  %v855_v6 = vld [vmem:[%s2966_s10 + $0xb8] sm:$0xff] }
 0x52a   :  { %v410_v20 = vmul.f32 %v399_v16, %v1868_v7  ;;  %v481_v7 = vld [vmem:[%s2964_s8 + $0x1c0] sm:$0xff]  ;;  %v518_v61 = vpack.c.bf16 %v486_v55, %v470_v54  ;;  %v847_v16 = vld [vmem:[%s2966_s10 + $0x78] sm:$0xff]  ;;  %v1101_v54 = vpack.c.bf16 %v859_v45, %v858_v44  ;;  %v1109_v55 = vpack.c.bf16 %v875_v47, %v874_v46  ;;  %v854_v4 = vld [vmem:[%s2966_s10 + $0xb0] sm:$0xff] }
 0x52b   :  { %v403_v17 = vmul.f32 0.5, %v402_v15  ;;  %v513_v36 = vpack.c.bf16 %v481_v7, %v465_v27  ;;  %v846_v15 = vld [vmem:[%s2966_s10 + $0x70] sm:$0xff]  ;;  %v892_v27 = vld [vmem:[%s2966_s10 + $0x1e0] sm:$0xff]  ;;  %v893_v7 = vld [vmem:[%s2966_s10 + $0x1e8] sm:$0xff] }
 0x52c   :  { %v416_v24 = vmul.f32 %v1600_v19, %v410_v20  ;;  %v863_v20 = vld [vmem:[%s2966_s10 + $0xf8] sm:$0xff]  ;;  %v870_v8 = vld [vmem:[%s2966_s10 + $0x130] sm:$0xff]  ;;  %v848_v47 = vld [vmem:[%s2966_s10 + $0x80] sm:$0xff] }
 0x52d   :  { %v404_v18 = vsub.f32 1.5, %v403_v17  ;;  %v894_v17 = vld [vmem:[%s2966_s10 + $0x1f0] sm:$0xff]  ;;  %v871_v9 = vld [vmem:[%s2966_s10 + $0x138] sm:$0xff] }
 0x52e   :  { %v2000_v30 = vadd.f32 %v1601_v23, %v416_v24  ;;  %v959_v46 = vld [vmem:[%s2966_s10 + $0x3f8] sm:$0xff] }
 0x52f   :  { %v405_v21 = vmul.f32 %v1626_v13, %v404_v18  ;;  %v895_v18 = vld [vmem:[%s2966_s10 + $0x1f8] sm:$0xff] }
 0x530   :  { %v1119_v24 = vpack.c.bf16 %v895_v18, %v894_v17  ;;  %v1099_v17 = vpack.c.bf16 %v855_v6, %v854_v4  ;;  %v1107_v18 = vpack.c.bf16 %v871_v9, %v870_v8  ;;  %v925_v4 = vld [vmem:[%s2966_s10 + $0x2e8] sm:$0xff]  ;;  %v940_v6 = vld [vmem:[%s2966_s10 + $0x360] sm:$0xff] }
 0x531   :  { %v409_v22 = vsel %vm408_vm10, %v1626_v13, %v405_v21  ;;  %v502_v13 = vpack.c.bf16 %v454_v5, %v438_v2  ;;  %v878_v21 = vld [vmem:[%s2966_s10 + $0x170] sm:$0xff]  ;;  %v1100_v2 = vpack.c.bf16 %v857_v57, %v856_v56  ;;  %v1108_v5 = vpack.c.bf16 %v873_v59, %v872_v58  ;;  %v943_v56 = vld [vmem:[%s2966_s10 + $0x378] sm:$0xff]  ;;  %v908_v59 = vld [vmem:[%s2966_s10 + $0x260] sm:$0xff] }
 0x532   :  { %v411_v25 = vmul.f32 %v409_v22, %v1874_v11  ;;  %v467_v11 = vld [vmem:[%s2964_s8 + $0x150] sm:$0xff]  ;;  %v879_v22 = vld [vmem:[%s2966_s10 + $0x178] sm:$0xff]  ;;  %v941_v8 = vld [vmem:[%s2966_s10 + $0x368] sm:$0xff] }
 0x533   :  { %v515_v40 = vpack.c.bf16 %v483_v32, %v467_v11  ;;  %v1111_v29 = vpack.c.bf16 %v879_v22, %v878_v21  ;;  %v860_v11 = vld [vmem:[%s2966_s10 + $0xe0] sm:$0xff]  ;;  %v861_v32 = vld [vmem:[%s2966_s10 + $0xe8] sm:$0xff] }
 0x534   :  { %v417_v26 = vmul.f32 %v1600_v19, %v411_v25  ;;  %v862_v19 = vld [vmem:[%s2966_s10 + $0xf0] sm:$0xff]  ;;  %v844_v25 = vld [vmem:[%s2966_s10 + $0x60] sm:$0xff]  ;;  %v1102_v42 = vpack.c.bf16 %v861_v32, %v860_v11  ;;  %v869_v22 = vld [vmem:[%s2966_s10 + $0x128] sm:$0xff] }
 0x535   :  { %v1103_v28 = vpack.c.bf16 %v863_v20, %v862_v19  ;;  %v852_v19 = vld [vmem:[%s2966_s10 + $0xa0] sm:$0xff]  ;;  %v853_v20 = vld [vmem:[%s2966_s10 + $0xa8] sm:$0xff]  ;;  %v851_v11 = vld [vmem:[%s2966_s10 + $0x98] sm:$0xff] }
 0x536   :  { %v2002_v31 = vadd.f32 %v1601_v23, %v417_v26  ;;  %v1095_v23 = vpack.c.bf16 %v847_v16, %v846_v15  ;;  %v845_v26 = vld [vmem:[%s2966_s10 + $0x68] sm:$0xff]  ;;  %v884_v15 = vld [vmem:[%s2966_s10 + $0x1a0] sm:$0xff]  ;;  %v866_v32 = vld [vmem:[%s2966_s10 + $0x110] sm:$0xff] }
 0x537   :  { %v885_v16 = vld [vmem:[%s2966_s10 + $0x1a8] sm:$0xff]  ;;  %v868_v21 = vld [vmem:[%s2966_s10 + $0x120] sm:$0xff]  ;;  %v1105_v45 = vpack.c.bf16 %v867_v33, %v866_v32  ;;  %v903_v32 = vld [vmem:[%s2966_s10 + $0x238] sm:$0xff] }
 0x538   :  { %v2015_v35 = vpack.c.bf16 %v2002_v31, %v2000_v30  ;;  %v950_v33 = vld [vmem:[%s2966_s10 + $0x3b0] sm:$0xff] }
 0x53a   :  { %1566 = vmatmul.msk.bf16.vlgmr.msra.gmra.mxu1 %vm66_vm0, %v2015_v35  ;;  %1567 = vmatmul.msk.bf16.vlgmr.msra.gmra.mxu3 %vm66_vm0, %v2015_v35 }
 0x53b   :  { %1568 = vmatmul.msk.bf16.vlgmr.msrb.gmra.mxu2 %vm66_vm0, %v2015_v35  ;;  %1569 = vmatmul.msk.bf16.vlgmr.msrb.gmra.mxu0 %vm66_vm0, %v2015_v35 }
 0x53c   :  { %678 = vmatpush.bf16.msra.mxu1 %v513_v36  ;;  %692 = vmatpush.bf16.msra.mxu3 %v514_v37  ;;  %v1094_v36 = vpack.c.bf16 %v845_v26, %v844_v25  ;;  %v1118_v37 = vpack.c.bf16 %v893_v7, %v892_v27  ;;  %v834_v25 = vld [vmem:[%s2966_s10 + $0x10] sm:$0xff]  ;;  %v835_v26 = vld [vmem:[%s2966_s10 + $0x18] sm:$0xff]  ;;  %v1098_v7 = vpack.c.bf16 %v853_v20, %v852_v19  ;;  %v904_v20 = vld [vmem:[%s2966_s10 + $0x240] sm:$0xff] }
 0x53d   :  { %706 = vmatpush.bf16.msrb.mxu2 %v515_v40  ;;  %720 = vmatpush.bf16.msrb.mxu0 %v516_v41  ;;  %v890_v40 = vld [vmem:[%s2966_s10 + $0x1d0] sm:$0xff]  ;;  %v891_v41 = vld [vmem:[%s2966_s10 + $0x1d8] sm:$0xff] }
 0x53e   :  { %v882_v27 = vld [vmem:[%s2966_s10 + $0x190] sm:$0xff] }
 0x540   :  { %679 = vmatpush.bf16.msra.mxu1 %v497_v48  ;;  %693 = vmatpush.bf16.msra.mxu3 %v498_v49  ;;  %v1093_v48 = vpack.c.bf16 %v843_v39, %v842_v38  ;;  %v1117_v49 = vpack.c.bf16 %v891_v41, %v890_v40  ;;  %v833_v38 = vld [vmem:[%s2966_s10 + $0x8] sm:$0xff]  ;;  %v880_v39 = vld [vmem:[%s2966_s10 + $0x180] sm:$0xff]  ;;  %v910_v41 = vld [vmem:[%s2966_s10 + $0x270] sm:$0xff] }
 0x541   :  { %707 = vmatpush.bf16.msrb.mxu2 %v499_v50  ;;  %721 = vmatpush.bf16.msrb.mxu0 %v500_v51  ;;  %v840_v50 = vld [vmem:[%s2966_s10 + $0x40] sm:$0xff]  ;;  %v841_v51 = vld [vmem:[%s2966_s10 + $0x48] sm:$0xff] }
 0x542   :  { %v881_v40 = vld [vmem:[%s2966_s10 + $0x188] sm:$0xff] }
 0x54a   :  { %1570 = vmatmul.msk.bf16.vlgmr.msrb.gmra.mxu1 %vm66_vm0, %v2015_v35  ;;  %1571 = vmatmul.msk.bf16.vlgmr.msrb.gmra.mxu3 %vm66_vm0, %v2015_v35 }
 0x54b   :  { %1572 = vmatmul.msk.bf16.vlgmr.msra.gmra.mxu2 %vm66_vm0, %v2015_v35  ;;  %1573 = vmatmul.msk.bf16.vlgmr.msra.gmra.mxu0 %vm66_vm0, %v2015_v35 }
 0x54c   :  { %734 = vmatpush.bf16.msrb.mxu1 %v517_v60  ;;  %748 = vmatpush.bf16.msrb.mxu3 %v518_v61  ;;  %v1092_v60 = vpack.c.bf16 %v841_v51, %v840_v50  ;;  %v1116_v61 = vpack.c.bf16 %v889_v53, %v888_v52  ;;  %v865_v50 = vld [vmem:[%s2966_s10 + $0x108] sm:$0xff]  ;;  %v926_v51 = vld [vmem:[%s2966_s10 + $0x2f0] sm:$0xff]  ;;  %v1088_v52 = vpack.c.bf16 %v833_v38, %v832_v34  ;;  %v920_v38 = vld [vmem:[%s2966_s10 + $0x2c0] sm:$0xff] }
 0x54d   :  { %762 = vmatpush.bf16.msra.mxu2 %v519_v0  ;;  %776 = vmatpush.bf16.msra.mxu0 %v520_v1  ;;  %v886_v0 = vld [vmem:[%s2966_s10 + $0x1b0] sm:$0xff]  ;;  %v887_v1 = vld [vmem:[%s2966_s10 + $0x1b8] sm:$0xff]  ;;  %v1112_v53 = vpack.c.bf16 %v881_v40, %v880_v39  ;;  %v921_v39 = vld [vmem:[%s2966_s10 + $0x2c8] sm:$0xff] }
 0x54e   :  { %v936_v40 = vld [vmem:[%s2966_s10 + $0x340] sm:$0xff] }
 0x550   :  { %735 = vmatpush.bf16.msrb.mxu1 %v501_v10  ;;  %749 = vmatpush.bf16.msrb.mxu3 %v502_v13  ;;  %v1091_v10 = vpack.c.bf16 %v839_v63, %v838_v62  ;;  %v1115_v13 = vpack.c.bf16 %v887_v1, %v886_v0  ;;  %v957_v62 = vld [vmem:[%s2966_s10 + $0x3e8] sm:$0xff] }
 0x551   :  { %763 = vmatpush.bf16.msra.mxu2 %v503_v14  ;;  %777 = vmatpush.bf16.msra.mxu0 %v504_v12  ;;  %v836_v14 = vld [vmem:[%s2966_s10 + $0x20] sm:$0xff]  ;;  %v837_v12 = vld [vmem:[%s2966_s10 + $0x28] sm:$0xff] }
 0x55a   :  { %1574 = vmatmul.msk.bf16.vlgmr.msra.gmra.mxu1 %vm66_vm0, %v2015_v35  ;;  %1575 = vmatmul.msk.bf16.vlgmr.msra.gmra.mxu3 %vm66_vm0, %v2015_v35 }
 0x55b   :  { %1576 = vmatmul.msk.bf16.vlgmr.msrb.gmra.mxu2 %vm66_vm0, %v2015_v35  ;;  %1577 = vmatmul.msk.bf16.vlgmr.msrb.gmra.mxu0 %vm66_vm0, %v2015_v35 }
 0x55c   :  { %1220 = vmatpush.bf16.msra.mxu1 %v1095_v23  ;;  %1262 = vmatpush.bf16.msrb.mxu0 %v1119_v24  ;;  %v1090_v23 = vpack.c.bf16 %v837_v12, %v836_v14  ;;  %v1114_v24 = vpack.c.bf16 %v885_v16, %v884_v15  ;;  %v907_v14 = vld [vmem:[%s2966_s10 + $0x258] sm:$0xff]  ;;  %v954_v12 = vld [vmem:[%s2966_s10 + $0x3d0] sm:$0xff] }
 0x55d   :  { %1234 = vmatpush.bf16.msra.mxu3 %v1103_v28  ;;  %1248 = vmatpush.bf16.msrb.mxu2 %v1111_v29  ;;  %v1106_v28 = vpack.c.bf16 %v869_v22, %v868_v21  ;;  %v850_v29 = vld [vmem:[%s2966_s10 + $0x90] sm:$0xff]  ;;  %v955_v15 = vld [vmem:[%s2966_s10 + $0x3d8] sm:$0xff]  ;;  %v905_v21 = vld [vmem:[%s2966_s10 + $0x248] sm:$0xff] }
 0x55e   :  { %v1097_v44 = vpack.c.bf16 %v851_v11, %v850_v29  ;;  %v1149_v19 = vpack.c.bf16 %v955_v15, %v954_v12  ;;  %v952_v22 = vld [vmem:[%s2966_s10 + $0x3c0] sm:$0xff]  ;;  %v902_v11 = vld [vmem:[%s2966_s10 + $0x230] sm:$0xff]  ;;  %v915_v12 = vld [vmem:[%s2966_s10 + $0x298] sm:$0xff] }
 0x55f   :  { %v1123_v34 = vpack.c.bf16 %v903_v32, %v902_v11  ;;  %v930_v15 = vld [vmem:[%s2966_s10 + $0x310] sm:$0xff] }
 0x560   :  { %1221 = vmatpush.bf16.msra.mxu1 %v1094_v36  ;;  %1263 = vmatpush.bf16.msrb.mxu0 %v1118_v37  ;;  %v1089_v36 = vpack.c.bf16 %v835_v26, %v834_v25  ;;  %v922_v26 = vld [vmem:[%s2966_s10 + $0x2d0] sm:$0xff] }
 0x561   :  { %1235 = vmatpush.bf16.msra.mxu3 %v1102_v42  ;;  %1249 = vmatpush.bf16.msrb.mxu2 %v1110_v43  ;;  %v911_v42 = vld [vmem:[%s2966_s10 + $0x278] sm:$0xff]  ;;  %v958_v43 = vld [vmem:[%s2966_s10 + $0x3f0] sm:$0xff] }
 0x562   :  { %v1127_v57 = vpack.c.bf16 %v911_v42, %v910_v41  ;;  %v1151_v58 = vpack.c.bf16 %v959_v46, %v958_v43  ;;  %v1132_v41 = vpack.c.bf16 %v921_v39, %v920_v38  ;;  %v937_v42 = vld [vmem:[%s2966_s10 + $0x348] sm:$0xff]  ;;  %v948_v46 = vld [vmem:[%s2966_s10 + $0x3a0] sm:$0xff]  ;;  %v974_v38 = vld [vmem:[%s2966_s10 + $0x470] sm:$0xff] }
 0x563   :  { %v1140_v43 = vpack.c.bf16 %v937_v42, %v936_v40  ;;  %v975_v39 = vld [vmem:[%s2966_s10 + $0x478] sm:$0xff]  ;;  %v1022_v42 = vld [vmem:[%s2966_s10 + $0x5f0] sm:$0xff] }
 0x564   :  { %1222 = vmatpush.bf16.msra.mxu1 %v1093_v48  ;;  %1264 = vmatpush.bf16.msrb.mxu0 %v1117_v49  ;;  %v849_v48 = vld [vmem:[%s2966_s10 + $0x88] sm:$0xff]  ;;  %v864_v49 = vld [vmem:[%s2966_s10 + $0x100] sm:$0xff] }
 0x565   :  { %1236 = vmatpush.bf16.msra.mxu3 %v1101_v54  ;;  %1250 = vmatpush.bf16.msrb.mxu2 %v1109_v55  ;;  %v927_v54 = vld [vmem:[%s2966_s10 + $0x2f8] sm:$0xff]  ;;  %v942_v55 = vld [vmem:[%s2966_s10 + $0x370] sm:$0xff]  ;;  %v1096_v63 = vpack.c.bf16 %v849_v48, %v848_v47  ;;  %v1104_v0 = vpack.c.bf16 %v865_v50, %v864_v49  ;;  %v949_v48 = vld [vmem:[%s2966_s10 + $0x3a8] sm:$0xff] }
 0x566   :  { %v1135_v1 = vpack.c.bf16 %v927_v54, %v926_v51  ;;  %v1146_v49 = vpack.c.bf16 %v949_v48, %v948_v46  ;;  %v918_v50 = vld [vmem:[%s2966_s10 + $0x2b0] sm:$0xff]  ;;  %v919_v51 = vld [vmem:[%s2966_s10 + $0x2b8] sm:$0xff]  ;;  %v1159_v48 = vpack.c.bf16 %v975_v39, %v974_v38 }
 0x567   :  { %v935_v54 = vld [vmem:[%s2966_s10 + $0x338] sm:$0xff]  ;;  %v986_v39 = vld [vmem:[%s2966_s10 + $0x4d0] sm:$0xff] }
 0x568   :  { %1223 = vmatpush.bf16.msra.mxu1 %v1092_v60  ;;  %1265 = vmatpush.bf16.msrb.mxu0 %v1116_v61  ;;  %v909_v60 = vld [vmem:[%s2966_s10 + $0x268] sm:$0xff]  ;;  %v956_v61 = vld [vmem:[%s2966_s10 + $0x3e0] sm:$0xff] }
 0x569   :  { %1237 = vmatpush.bf16.msra.mxu3 %v1100_v2  ;;  %1251 = vmatpush.bf16.msrb.mxu2 %v1108_v5  ;;  %v1143_v2 = vpack.c.bf16 %v943_v56, %v942_v55  ;;  %v924_v5 = vld [vmem:[%s2966_s10 + $0x2e0] sm:$0xff]  ;;  %v1126_v9 = vpack.c.bf16 %v909_v60, %v908_v59  ;;  %v898_v56 = vld [vmem:[%s2966_s10 + $0x210] sm:$0xff]  ;;  %v947_v60 = vld [vmem:[%s2966_s10 + $0x398] sm:$0xff] }
 0x56a   :  { %1578 = vmatmul.msk.bf16.vlgmr.msrb.gmra.mxu1 %vm66_vm0, %v2015_v35  ;;  %1579 = vmatmul.msk.bf16.vlgmr.msrb.gmra.mxu3 %vm66_vm0, %v2015_v35  ;;  %v1134_v16 = vpack.c.bf16 %v925_v4, %v924_v5  ;;  %v896_v4 = vld [vmem:[%s2966_s10 + $0x200] sm:$0xff] }
 0x56b   :  { %1580 = vmatmul.msk.bf16.vlgmr.msra.gmra.mxu2 %vm66_vm0, %v2015_v35  ;;  %1581 = vmatmul.msk.bf16.vlgmr.msra.gmra.mxu0 %vm66_vm0, %v2015_v35  ;;  %v883_v35 = vld [vmem:[%s2966_s10 + $0x198] sm:$0xff] }
 0x56c   :  { %1224 = vmatpush.bf16.msra.mxu1 %v1091_v10  ;;  %1266 = vmatpush.bf16.msrb.mxu0 %v1115_v13  ;;  %v1113_v37 = vpack.c.bf16 %v883_v35, %v882_v27  ;;  %v1150_v10 = vpack.c.bf16 %v957_v62, %v956_v61  ;;  %v906_v13 = vld [vmem:[%s2966_s10 + $0x250] sm:$0xff]  ;;  %v923_v27 = vld [vmem:[%s2966_s10 + $0x2d8] sm:$0xff]  ;;  %v916_v62 = vld [vmem:[%s2966_s10 + $0x2a0] sm:$0xff] }
 0x56d   :  { %1238 = vmatpush.bf16.msra.mxu3 %v1099_v17  ;;  %1252 = vmatpush.bf16.msrb.mxu2 %v1107_v18  ;;  %v1142_v17 = vpack.c.bf16 %v941_v8, %v940_v6  ;;  %v1125_v18 = vpack.c.bf16 %v907_v14, %v906_v13  ;;  %v938_v35 = vld [vmem:[%s2966_s10 + $0x350] sm:$0xff]  ;;  %v897_v6 = vld [vmem:[%s2966_s10 + $0x208] sm:$0xff]  ;;  %v944_v8 = vld [vmem:[%s2966_s10 + $0x380] sm:$0xff] }
 0x56e   :  { %v914_v14 = vld [vmem:[%s2966_s10 + $0x290] sm:$0xff] }
 0x570   :  { %1225 = vmatpush.bf16.msra.mxu1 %v1090_v23  ;;  %1267 = vmatpush.bf16.msrb.mxu0 %v1114_v24  ;;  %v953_v23 = vld [vmem:[%s2966_s10 + $0x3c8] sm:$0xff]  ;;  %v1124_v24 = vpack.c.bf16 %v905_v21, %v904_v20 }
 0x571   :  { %1239 = vmatpush.bf16.msra.mxu3 %v1098_v7  ;;  %1253 = vmatpush.bf16.msrb.mxu2 %v1106_v28  ;;  %v1148_v25 = vpack.c.bf16 %v953_v23, %v952_v22  ;;  %v1133_v7 = vpack.c.bf16 %v923_v27, %v922_v26  ;;  %v939_v28 = vld [vmem:[%s2966_s10 + $0x358] sm:$0xff]  ;;  %v913_v20 = vld [vmem:[%s2966_s10 + $0x288] sm:$0xff]  ;;  %v928_v22 = vld [vmem:[%s2966_s10 + $0x300] sm:$0xff] }
 0x572   :  { %v1141_v29 = vpack.c.bf16 %v939_v28, %v938_v35  ;;  %v929_v23 = vld [vmem:[%s2966_s10 + $0x308] sm:$0xff] }
 0x574   :  { %1226 = vmatpush.bf16.msra.mxu1 %v1089_v36  ;;  %1268 = vmatpush.bf16.msrb.mxu0 %v1113_v37  ;;  %v951_v36 = vld [vmem:[%s2966_s10 + $0x3b8] sm:$0xff] }
 0x575   :  { %1240 = vmatpush.bf16.msra.mxu3 %v1097_v44  ;;  %1254 = vmatpush.bf16.msrb.mxu2 %v1105_v45  ;;  %v1147_v37 = vpack.c.bf16 %v951_v36, %v950_v33  ;;  %v900_v44 = vld [vmem:[%s2966_s10 + $0x220] sm:$0xff]  ;;  %v901_v45 = vld [vmem:[%s2966_s10 + $0x228] sm:$0xff] }
 0x576   :  { %v1122_v47 = vpack.c.bf16 %v901_v45, %v900_v44 }
 0x578   :  { %1227 = vmatpush.bf16.msra.mxu1 %v1088_v52  ;;  %1269 = vmatpush.bf16.msrb.mxu0 %v1112_v53  ;;  %v934_v52 = vld [vmem:[%s2966_s10 + $0x330] sm:$0xff]  ;;  %v1131_v53 = vpack.c.bf16 %v919_v51, %v918_v50 }
 0x579   :  { %1241 = vmatpush.bf16.msra.mxu3 %v1096_v63  ;;  %1255 = vmatpush.bf16.msrb.mxu2 %v1104_v0  ;;  %v1139_v55 = vpack.c.bf16 %v935_v54, %v934_v52  ;;  %v917_v63 = vld [vmem:[%s2966_s10 + $0x2a8] sm:$0xff]  ;;  %v932_v0 = vld [vmem:[%s2966_s10 + $0x320] sm:$0xff] }
 0x57a   :  { %v972_v52 = vld [vmem:[%s2966_s10 + $0x460] sm:$0xff] }
 0x57c   :  { %1276 = vmatpush.bf16.msrb.mxu1 %v1127_v57  ;;  %1318 = vmatpush.bf16.msra.mxu0 %v1151_v58  ;;  %v899_v57 = vld [vmem:[%s2966_s10 + $0x218] sm:$0xff]  ;;  %v946_v58 = vld [vmem:[%s2966_s10 + $0x390] sm:$0xff] }
 0x57d   :  { %1290 = vmatpush.bf16.msrb.mxu3 %v1135_v1  ;;  %1304 = vmatpush.bf16.msra.mxu2 %v1143_v2  ;;  %v1121_v59 = vpack.c.bf16 %v899_v57, %v898_v56  ;;  %v1145_v61 = vpack.c.bf16 %v947_v60, %v946_v58  ;;  %v1130_v1 = vpack.c.bf16 %v917_v63, %v916_v62  ;;  %v933_v2 = vld [vmem:[%s2966_s10 + $0x328] sm:$0xff]  ;;  %v1020_v57 = vld [vmem:[%s2966_s10 + $0x5e0] sm:$0xff]  ;;  %v991_v62 = vld [vmem:[%s2966_s10 + $0x4f8] sm:$0xff] }
 0x57e   :  { %v1138_v5 = vpack.c.bf16 %v933_v2, %v932_v0  ;;  %v1021_v58 = vld [vmem:[%s2966_s10 + $0x5e8] sm:$0xff]  ;;  %v1006_v2 = vld [vmem:[%s2966_s10 + $0x570] sm:$0xff] }
 0x580   :  { %1277 = vmatpush.bf16.msrb.mxu1 %v1126_v9  ;;  %1319 = vmatpush.bf16.msra.mxu0 %v1150_v10  ;;  %v1120_v9 = vpack.c.bf16 %v897_v6, %v896_v4  ;;  %v945_v10 = vld [vmem:[%s2966_s10 + $0x388] sm:$0xff] }
 0x581   :  { %1291 = vmatpush.bf16.msrb.mxu3 %v1134_v16  ;;  %1305 = vmatpush.bf16.msra.mxu2 %v1142_v17  ;;  %v1144_v13 = vpack.c.bf16 %v945_v10, %v944_v8  ;;  %v1129_v16 = vpack.c.bf16 %v915_v12, %v914_v14  ;;  %v931_v17 = vld [vmem:[%s2966_s10 + $0x318] sm:$0xff]  ;;  %v970_v10 = vld [vmem:[%s2966_s10 + $0x450] sm:$0xff] }
 0x584   :  { %1278 = vmatpush.bf16.msrb.mxu1 %v1125_v18  ;;  %1320 = vmatpush.bf16.msra.mxu0 %v1149_v19  ;;  %v1137_v18 = vpack.c.bf16 %v931_v17, %v930_v15  ;;  %v912_v19 = vld [vmem:[%s2966_s10 + $0x280] sm:$0xff]  ;;  %v1019_v17 = vld [vmem:[%s2966_s10 + $0x5d8] sm:$0xff] }
 0x585   :  { %1292 = vmatpush.bf16.msrb.mxu3 %v1133_v7  ;;  %1306 = vmatpush.bf16.msra.mxu2 %v1141_v29  ;;  %v1128_v21 = vpack.c.bf16 %v913_v20, %v912_v19 }
 0x588   :  { %1279 = vmatpush.bf16.msrb.mxu1 %v1124_v24  ;;  %1321 = vmatpush.bf16.msra.mxu0 %v1148_v25  ;;  %v1136_v24 = vpack.c.bf16 %v929_v23, %v928_v22  ;;  %v2508_v25 = vld [vmem:[%s2965_s9] sm:$0xff]  ;;  %v989_v22 = vld [vmem:[%s2966_s10 + $0x4e8] sm:$0xff] }
 0x589   :  { %1293 = vmatpush.bf16.msrb.mxu3 %v1132_v41  ;;  %1307 = vmatpush.bf16.msra.mxu2 %v1140_v43  ;;  %v525_v35 = vperm.slane %v2508_v25, 0  ;;  %v528_v7 = vperm.slane %v2508_v25, 3  ;;  %v527_v40 = vperm.slane %v2508_v25, 2  ;;  %v1023_v43 = vld [vmem:[%s2966_s10 + $0x5f8] sm:$0xff]  ;;  %v529_v19 = vperm.slane %v2508_v25, 4 }
 0x58a   :  { %v1183_v51 = vpack.c.bf16 %v1023_v43, %v1022_v42 }
 0x58c   :  { %1280 = vmatpush.bf16.msrb.mxu1 %v1123_v34  ;;  %1322 = vmatpush.bf16.msra.mxu0 %v1147_v37  ;;  %v526_v34 = vperm.slane %v2508_v25, 1 }
 0x58d   :  { %1294 = vmatpush.bf16.msrb.mxu3 %v1131_v53  ;;  %1308 = vmatpush.bf16.msra.mxu2 %v1139_v55  ;;  %v973_v53 = vld [vmem:[%s2966_s10 + $0x468] sm:$0xff] }
 0x590   :  { %1281 = vmatpush.bf16.msrb.mxu1 %v1122_v47  ;;  %1323 = vmatpush.bf16.msra.mxu0 %v1146_v49 }
 0x591   :  { %1295 = vmatpush.bf16.msrb.mxu3 %v1130_v1  ;;  %1309 = vmatpush.bf16.msra.mxu2 %v1138_v5  ;;  %v1158_v1 = vpack.c.bf16 %v973_v53, %v972_v52  ;;  %v1007_v5 = vld [vmem:[%s2966_s10 + $0x578] sm:$0xff]  ;;  %v531_v52 = vperm.slane %v2508_v25, 6 }
 0x592   :  { %v1175_v20 = vpack.c.bf16 %v1007_v5, %v1006_v2 }
 0x594   :  { %1282 = vmatpush.bf16.msrb.mxu1 %v1121_v59  ;;  %1324 = vmatpush.bf16.msra.mxu0 %v1145_v61  ;;  %v990_v61 = vld [vmem:[%s2966_s10 + $0x4f0] sm:$0xff] }
 0x595   :  { %1296 = vmatpush.bf16.msrb.mxu3 %v1129_v16  ;;  %1310 = vmatpush.bf16.msra.mxu2 %v1137_v18  ;;  %v1167_v15 = vpack.c.bf16 %v991_v62, %v990_v61  ;;  %v1018_v16 = vld [vmem:[%s2966_s10 + $0x5d0] sm:$0xff] }
 0x598   :  { %1283 = vmatpush.bf16.msrb.mxu1 %v1120_v9  ;;  %1325 = vmatpush.bf16.msra.mxu0 %v1144_v13  ;;  %v1182_v9 = vpack.c.bf16 %v1021_v58, %v1020_v57  ;;  %v971_v13 = vld [vmem:[%s2966_s10 + $0x458] sm:$0xff] }
 0x599   :  { %1297 = vmatpush.bf16.msrb.mxu3 %v1128_v21  ;;  %1311 = vmatpush.bf16.msra.mxu2 %v1136_v24  ;;  %v988_v21 = vld [vmem:[%s2966_s10 + $0x4e0] sm:$0xff]  ;;  %v532_v24 = vperm.slane %v2508_v25, 7 }
 0x5b7   :  { %v569_v26 = vpop.f32.mrf.mxu1 }
 0x5b8   :  { %v611_v27 = vpop.f32.mrf.mxu0  ;;  %v570_v29 = vadd.f32 %v569_v26, %v525_v35  ;;  %v1157_v26 = vpack.c.bf16 %v971_v13, %v970_v10 }
 0x5b9   :  { %v612_v32 = vadd.f32 %v611_v27, %v528_v7  ;;  %v1004_v27 = vld [vmem:[%s2966_s10 + $0x560] sm:$0xff] }
 0x5ba   :  { %v784_v44 = vmax.f32 %v570_v29, 0.0  ;;  %v969_v29 = vld [vmem:[%s2966_s10 + $0x448] sm:$0xff] }
 0x5bb   :  { %v787_v46 = vmax.f32 %v612_v32, 0.0  ;;  %v1166_v32 = vpack.c.bf16 %v989_v22, %v988_v21  ;;  %v2647_v22 = vld [vmem:[%s2965_s9 + $0x8] sm:$0xff] }
 0x5bd   :  { %v583_v28 = vpop.f32.mrf.mxu3 }
 0x5be   :  { %v597_v11 = vpop.f32.mrf.mxu2  ;;  %v584_v49 = vadd.f32 %v583_v28, %v526_v34  ;;  %v968_v28 = vld [vmem:[%s2966_s10 + $0x440] sm:$0xff] }
 0x5bf   :  { %v571_v33 = vpop.f32.mrf.mxu1  ;;  %v598_v54 = vadd.f32 %v597_v11, %v527_v40  ;;  %v1156_v43 = vpack.c.bf16 %v969_v29, %v968_v28 }
 0x5c0   :  { %v572_v36 = vadd.f32 %v571_v33, %v525_v35  ;;  %v613_v37 = vpop.f32.mrf.mxu0  ;;  %v785_v4 = vmax.f32 %v584_v49, 0.0  ;;  %v1005_v35 = vld [vmem:[%s2966_s10 + $0x568] sm:$0xff]  ;;  %v1016_v33 = vld [vmem:[%s2966_s10 + $0x5c0] sm:$0xff] }
 0x5c1   :  { %v614_v41 = vadd.f32 %v613_v37, %v528_v7  ;;  %v786_v14 = vmax.f32 %v598_v54, 0.0  ;;  %v1181_v7 = vpack.c.bf16 %v1019_v17, %v1018_v16  ;;  %v1174_v38 = vpack.c.bf16 %v1005_v35, %v1004_v27  ;;  %v999_v27 = vld [vmem:[%s2966_s10 + $0x538] sm:$0xff] }
 0x5c2   :  { %v800_v45 = vmax.f32 %v572_v36, 0.0 }
 0x5c3   :  { %v803_v47 = vmax.f32 %v614_v41, 0.0 }
 0x5c4   :  { %v816_v50 = vpack.c.bf16 %v800_v45, %v784_v44  ;;  %v1002_v44 = vld [vmem:[%s2966_s10 + $0x550] sm:$0xff]  ;;  %v1003_v45 = vld [vmem:[%s2966_s10 + $0x558] sm:$0xff] }
 0x5c5   :  { %v819_v55 = vpack.c.bf16 %v803_v47, %v787_v46  ;;  %v585_v56 = vpop.f32.mrf.mxu3  ;;  %v530_v46 = vperm.slane %v2508_v25, 5  ;;  %v985_v25 = vld [vmem:[%s2966_s10 + $0x4c8] sm:$0xff] }
 0x5c6   :  { %v586_v59 = vadd.f32 %v585_v56, %v526_v34  ;;  %v599_v60 = vpop.f32.mrf.mxu2  ;;  %1228 = vmatmul.bf16.vlgmr.msra.gmra.mxu1 %v816_v50  ;;  %v1017_v34 = vld [vmem:[%s2966_s10 + $0x5c8] sm:$0xff]  ;;  %v966_v50 = vld [vmem:[%s2966_s10 + $0x430] sm:$0xff]  ;;  %v1015_v56 = vld [vmem:[%s2966_s10 + $0x5b8] sm:$0xff] }
 0x5c7   :  { %v600_v63 = vadd.f32 %v599_v60, %v527_v40  ;;  %1270 = vmatmul.bf16.vlgmr.msrb.gmra.mxu0 %v819_v55  ;;  %1332 = vmatpush.bf16.msra.mxu1 %v1159_v48  ;;  %v625_v0 = vpop.f32.mrf.mxu1  ;;  %v987_v40 = vld [vmem:[%s2966_s10 + $0x4d8] sm:$0xff]  ;;  %v1180_v49 = vpack.c.bf16 %v1017_v34, %v1016_v33  ;;  %v1014_v55 = vld [vmem:[%s2966_s10 + $0x5b0] sm:$0xff]  ;;  %v984_v60 = vld [vmem:[%s2966_s10 + $0x4c0] sm:$0xff] }
 0x5c8   :  { %v801_v6 = vmax.f32 %v586_v59, 0.0  ;;  %1374 = vmatpush.bf16.msrb.mxu0 %v1183_v51  ;;  %v667_v8 = vpop.f32.mrf.mxu0  ;;  %v626_v36 = vadd.f32 %v625_v0, %v529_v19  ;;  %v967_v51 = vld [vmem:[%s2966_s10 + $0x438] sm:$0xff]  ;;  %v1165_v54 = vpack.c.bf16 %v987_v40, %v986_v39  ;;  %v1173_v59 = vpack.c.bf16 %v1003_v45, %v1002_v44  ;;  %v1000_v0 = vld [vmem:[%s2966_s10 + $0x540] sm:$0xff] }
 0x5c9   :  { %v802_v12 = vmax.f32 %v600_v63, 0.0  ;;  %v668_v41 = vadd.f32 %v667_v8, %v532_v24  ;;  %v1155_v63 = vpack.c.bf16 %v967_v51, %v966_v50  ;;  %v965_v8 = vld [vmem:[%s2966_s10 + $0x428] sm:$0xff]  ;;  %v533_v40 = vperm.slane %v2647_v22, 0 }
 0x5ca   :  { %v817_v18 = vpack.c.bf16 %v801_v6, %v785_v4  ;;  %v788_v57 = vmax.f32 %v626_v36, 0.0  ;;  %v1179_v4 = vpack.c.bf16 %v1015_v56, %v1014_v55  ;;  %v964_v6 = vld [vmem:[%s2966_s10 + $0x420] sm:$0xff]  ;;  %v536_v45 = vperm.slane %v2647_v22, 3  ;;  %v961_v51 = vld [vmem:[%s2966_s10 + $0x408] sm:$0xff]  ;;  %v1038_v56 = vld [vmem:[%s2966_s10 + $0x670] sm:$0xff] }
 0x5cb   :  { %v818_v23 = vpack.c.bf16 %v802_v12, %v786_v14  ;;  %1333 = vmatpush.bf16.msra.mxu1 %v1158_v1  ;;  %v791_v61 = vmax.f32 %v668_v41, 0.0  ;;  %v1001_v1 = vld [vmem:[%s2966_s10 + $0x548] sm:$0xff]  ;;  %v1164_v14 = vpack.c.bf16 %v985_v25, %v984_v60  ;;  %v1012_v12 = vld [vmem:[%s2966_s10 + $0x5a0] sm:$0xff] }
 0x5cc   :  { %1375 = vmatpush.bf16.msrb.mxu0 %v1182_v9  ;;  %1242 = vmatmul.bf16.vlgmr.msra.gmra.mxu3 %v817_v18  ;;  %v1172_v18 = vpack.c.bf16 %v1001_v1, %v1000_v0 }
 0x5cd   :  { %1256 = vmatmul.bf16.vlgmr.msrb.gmra.mxu2 %v818_v23  ;;  %1346 = vmatpush.bf16.msra.mxu3 %v1167_v15  ;;  %v639_v11 = vpop.f32.mrf.mxu3  ;;  %v1013_v15 = vld [vmem:[%s2966_s10 + $0x5a8] sm:$0xff] }
 0x5ce   :  { %1360 = vmatpush.bf16.msrb.mxu2 %v1175_v20  ;;  %v653_v37 = vpop.f32.mrf.mxu2  ;;  %v640_v2 = vadd.f32 %v639_v11, %v530_v46  ;;  %v983_v20 = vld [vmem:[%s2966_s10 + $0x4b8] sm:$0xff]  ;;  %v1178_v29 = vpack.c.bf16 %v1013_v15, %v1012_v12  ;;  %v962_v11 = vld [vmem:[%s2966_s10 + $0x410] sm:$0xff]  ;;  %v1037_v12 = vld [vmem:[%s2966_s10 + $0x668] sm:$0xff]  ;;  %v535_v15 = vperm.slane %v2647_v22, 2 }
 0x5cf   :  { %1334 = vmatpush.bf16.msra.mxu1 %v1157_v26  ;;  %v627_v42 = vpop.f32.mrf.mxu1  ;;  %v654_v9 = vadd.f32 %v653_v37, %v531_v52  ;;  %v998_v26 = vld [vmem:[%s2966_s10 + $0x530] sm:$0xff] }
 0x5d0   :  { %1376 = vmatpush.bf16.msrb.mxu0 %v1181_v7  ;;  %v628_v47 = vadd.f32 %v627_v42, %v529_v19  ;;  %v669_v48 = vpop.f32.mrf.mxu0  ;;  %v982_v19 = vld [vmem:[%s2966_s10 + $0x4b0] sm:$0xff]  ;;  %v789_v35 = vmax.f32 %v640_v2, 0.0  ;;  %v1171_v41 = vpack.c.bf16 %v999_v27, %v998_v26  ;;  %v980_v42 = vld [vmem:[%s2966_s10 + $0x4a0] sm:$0xff]  ;;  %v977_v27 = vld [vmem:[%s2966_s10 + $0x488] sm:$0xff] }
 0x5d1   :  { %v670_v53 = vadd.f32 %v669_v48, %v532_v24  ;;  %1347 = vmatpush.bf16.msra.mxu3 %v1166_v32  ;;  %v1154_v24 = vpack.c.bf16 %v965_v8, %v964_v6  ;;  %v963_v32 = vld [vmem:[%s2966_s10 + $0x418] sm:$0xff]  ;;  %v790_v33 = vmax.f32 %v654_v9, 0.0  ;;  %v1163_v36 = vpack.c.bf16 %v983_v20, %v982_v19  ;;  %v1010_v37 = vld [vmem:[%s2966_s10 + $0x590] sm:$0xff]  ;;  %v997_v48 = vld [vmem:[%s2966_s10 + $0x528] sm:$0xff] }
 0x5d2   :  { %v804_v58 = vmax.f32 %v628_v47, 0.0  ;;  %1361 = vmatpush.bf16.msrb.mxu2 %v1174_v38  ;;  %v1011_v38 = vld [vmem:[%s2966_s10 + $0x598] sm:$0xff]  ;;  %v996_v47 = vld [vmem:[%s2966_s10 + $0x520] sm:$0xff]  ;;  %v534_v6 = vperm.slane %v2647_v22, 1  ;;  %v1085_v20 = vld [vmem:[%s2966_s10 + $0x7e8] sm:$0xff] }
 0x5d3   :  { %v807_v62 = vmax.f32 %v670_v53, 0.0  ;;  %1335 = vmatpush.bf16.msra.mxu1 %v1156_v43  ;;  %v981_v43 = vld [vmem:[%s2966_s10 + $0x4a8] sm:$0xff]  ;;  %v1177_v50 = vpack.c.bf16 %v1011_v38, %v1010_v37  ;;  %v1170_v25 = vpack.c.bf16 %v997_v48, %v996_v47  ;;  %v1084_v19 = vld [vmem:[%s2966_s10 + $0x7e0] sm:$0xff]  ;;  %v1070_v38 = vld [vmem:[%s2966_s10 + $0x770] sm:$0xff] }
 0x5d4   :  { %v820_v5 = vpack.c.bf16 %v804_v58, %v788_v57  ;;  %1377 = vmatpush.bf16.msrb.mxu0 %v1180_v49  ;;  %v960_v49 = vld [vmem:[%s2966_s10 + $0x400] sm:$0xff]  ;;  %v1009_v53 = vld [vmem:[%s2966_s10 + $0x588] sm:$0xff]  ;;  %v1162_v55 = vpack.c.bf16 %v981_v43, %v980_v42  ;;  %v1039_v57 = vld [vmem:[%s2966_s10 + $0x678] sm:$0xff]  ;;  %v1214_v37 = vpack.c.bf16 %v1085_v20, %v1084_v19 }
 0x5d5   :  { %v823_v10 = vpack.c.bf16 %v807_v62, %v791_v61  ;;  %1348 = vmatpush.bf16.msra.mxu3 %v1165_v54  ;;  %v641_v13 = vpop.f32.mrf.mxu3  ;;  %v1086_v58 = vld [vmem:[%s2966_s10 + $0x7f0] sm:$0xff]  ;;  %v1087_v61 = vld [vmem:[%s2966_s10 + $0x7f8] sm:$0xff]  ;;  %v1152_v2 = vpack.c.bf16 %v961_v51, %v960_v49  ;;  %v976_v26 = vld [vmem:[%s2966_s10 + $0x480] sm:$0xff] }
 0x5d6   :  { %1362 = vmatpush.bf16.msrb.mxu2 %v1173_v59  ;;  %v642_v16 = vadd.f32 %v641_v13, %v530_v46  ;;  %v655_v17 = vpop.f32.mrf.mxu2  ;;  %1284 = vmatmul.bf16.vlgmr.msrb.gmra.mxu1 %v820_v5  ;;  %v1153_v46 = vpack.c.bf16 %v963_v32, %v962_v11  ;;  %v978_v62 = vld [vmem:[%s2966_s10 + $0x490] sm:$0xff]  ;;  %v1191_v13 = vpack.c.bf16 %v1039_v57, %v1038_v56  ;;  %v993_v11 = vld [vmem:[%s2966_s10 + $0x508] sm:$0xff]  ;;  %v1083_v51 = vld [vmem:[%s2966_s10 + $0x7d8] sm:$0xff] }
 0x5d7   :  { %v656_v21 = vadd.f32 %v655_v17, %v531_v52  ;;  %1326 = vmatmul.bf16.vlgmr.msra.gmra.mxu0 %v823_v10  ;;  %1336 = vmatpush.bf16.msra.mxu1 %v1155_v63  ;;  %v681_v23 = vpop.f32.mrf.mxu1  ;;  %v1008_v52 = vld [vmem:[%s2966_s10 + $0x580] sm:$0xff]  ;;  %v979_v63 = vld [vmem:[%s2966_s10 + $0x498] sm:$0xff]  ;;  %v994_v5 = vld [vmem:[%s2966_s10 + $0x510] sm:$0xff]  ;;  %v1215_v17 = vpack.c.bf16 %v1087_v61, %v1086_v58  ;;  %v1160_v43 = vpack.c.bf16 %v977_v27, %v976_v26 }
 0x5d8   :  { %v805_v7 = vmax.f32 %v642_v16, 0.0  ;;  %1378 = vmatpush.bf16.msrb.mxu0 %v1179_v4  ;;  %v723_v28 = vpop.f32.mrf.mxu0  ;;  %v682_v59 = vadd.f32 %v681_v23, %v533_v40  ;;  %v995_v4 = vld [vmem:[%s2966_s10 + $0x518] sm:$0xff]  ;;  %v1176_v10 = vpack.c.bf16 %v1009_v53, %v1008_v52  ;;  %v1054_v32 = vld [vmem:[%s2966_s10 + $0x6f0] sm:$0xff]  ;;  %v1048_v26 = vld [vmem:[%s2966_s10 + $0x6c0] sm:$0xff] }
 0x5d9   :  { %v806_v34 = vmax.f32 %v656_v21, 0.0  ;;  %1349 = vmatpush.bf16.msra.mxu3 %v1164_v14  ;;  %v724_v0 = vadd.f32 %v723_v28, %v536_v45  ;;  %v1036_v14 = vld [vmem:[%s2966_s10 + $0x660] sm:$0xff]  ;;  %v1031_v19 = vld [vmem:[%s2966_s10 + $0x638] sm:$0xff]  ;;  %v1049_v27 = vld [vmem:[%s2966_s10 + $0x6c8] sm:$0xff] }
 0x5da   :  { %v821_v39 = vpack.c.bf16 %v805_v7, %v789_v35  ;;  %1363 = vmatpush.bf16.msrb.mxu2 %v1172_v18  ;;  %v1161_v18 = vpack.c.bf16 %v979_v63, %v978_v62  ;;  %v792_v21 = vmax.f32 %v682_v59, 0.0  ;;  %v992_v35 = vld [vmem:[%s2966_s10 + $0x500] sm:$0xff] }
 0x5db   :  { %v822_v44 = vpack.c.bf16 %v806_v34, %v790_v33  ;;  %1337 = vmatpush.bf16.msra.mxu1 %v1154_v24  ;;  %v1169_v24 = vpack.c.bf16 %v995_v4, %v994_v5  ;;  %v795_v7 = vmax.f32 %v724_v0, 0.0  ;;  %v1055_v33 = vld [vmem:[%s2966_s10 + $0x6f8] sm:$0xff]  ;;  %v1168_v48 = vpack.c.bf16 %v993_v11, %v992_v35  ;;  %v1068_v59 = vld [vmem:[%s2966_s10 + $0x760] sm:$0xff]  ;;  %v1033_v0 = vld [vmem:[%s2966_s10 + $0x648] sm:$0xff] }
 0x5dc   :  { %1379 = vmatpush.bf16.msrb.mxu0 %v1178_v29  ;;  %1298 = vmatmul.bf16.vlgmr.msrb.gmra.mxu3 %v821_v39  ;;  %v1190_v29 = vpack.c.bf16 %v1037_v12, %v1036_v14  ;;  %v1071_v39 = vld [vmem:[%s2966_s10 + $0x778] sm:$0xff]  ;;  %v1199_v49 = vpack.c.bf16 %v1055_v33, %v1054_v32  ;;  %v1032_v63 = vld [vmem:[%s2966_s10 + $0x640] sm:$0xff]  ;;  %v1081_v4 = vld [vmem:[%s2966_s10 + $0x7c8] sm:$0xff] }
 0x5dd   :  { %1312 = vmatmul.bf16.vlgmr.msra.gmra.mxu2 %v822_v44  ;;  %1350 = vmatpush.bf16.msra.mxu3 %v1163_v36  ;;  %v695_v54 = vpop.f32.mrf.mxu3  ;;  %v1034_v44 = vld [vmem:[%s2966_s10 + $0x650] sm:$0xff]  ;;  %v1207_v53 = vpack.c.bf16 %v1071_v39, %v1070_v38  ;;  %v1080_v5 = vld [vmem:[%s2966_s10 + $0x7c0] sm:$0xff]  ;;  %v1188_v14 = vpack.c.bf16 %v1033_v0, %v1032_v63  ;;  %v1029_v32 = vld [vmem:[%s2966_s10 + $0x628] sm:$0xff] }
 0x5de   :  { %1364 = vmatpush.bf16.msrb.mxu2 %v1171_v41  ;;  %v709_v60 = vpop.f32.mrf.mxu2  ;;  %v696_v34 = vadd.f32 %v695_v54, %v534_v6  ;;  %v1052_v54 = vld [vmem:[%s2966_s10 + $0x6e0] sm:$0xff]  ;;  %v1066_v12 = vld [vmem:[%s2966_s10 + $0x750] sm:$0xff]  ;;  %v1025_v63 = vld [vmem:[%s2966_s10 + $0x608] sm:$0xff] }
 0x5df   :  { %1338 = vmatpush.bf16.msra.mxu1 %v1153_v46  ;;  %v683_v1 = vpop.f32.mrf.mxu1  ;;  %v1028_v11 = vld [vmem:[%s2966_s10 + $0x620] sm:$0xff] }
 0x5e0   :  { %1380 = vmatpush.bf16.msrb.mxu0 %v1177_v50  ;;  %v684_v8 = vadd.f32 %v683_v1, %v533_v40  ;;  %v725_v9 = vpop.f32.mrf.mxu0  ;;  %v710_v40 = vadd.f32 %v709_v60, %v535_v15  ;;  %v1082_v50 = vld [vmem:[%s2966_s10 + $0x7d0] sm:$0xff]  ;;  %v793_v56 = vmax.f32 %v696_v34, 0.0  ;;  %v1069_v60 = vld [vmem:[%s2966_s10 + $0x768] sm:$0xff]  ;;  %v1196_v34 = vpack.c.bf16 %v1049_v27, %v1048_v26 }
 0x5e1   :  { %v726_v16 = vadd.f32 %v725_v9, %v536_v45  ;;  %1351 = vmatpush.bf16.msra.mxu3 %v1162_v55  ;;  %v1035_v45 = vld [vmem:[%s2966_s10 + $0x658] sm:$0xff]  ;;  %v1053_v55 = vld [vmem:[%s2966_s10 + $0x6e8] sm:$0xff]  ;;  %v1213_v62 = vpack.c.bf16 %v1083_v51, %v1082_v50  ;;  %v1050_v9 = vld [vmem:[%s2966_s10 + $0x6d0] sm:$0xff] }
 0x5e2   :  { %v808_v23 = vmax.f32 %v684_v8, 0.0  ;;  %1365 = vmatpush.bf16.msrb.mxu2 %v1170_v25  ;;  %v1189_v58 = vpack.c.bf16 %v1035_v45, %v1034_v44  ;;  %v794_v25 = vmax.f32 %v710_v40, 0.0  ;;  %v1206_v8 = vpack.c.bf16 %v1069_v60, %v1068_v59  ;;  %v1046_v40 = vld [vmem:[%s2966_s10 + $0x6b0] sm:$0xff]  ;;  %v1063_v44 = vld [vmem:[%s2966_s10 + $0x738] sm:$0xff]  ;;  %v1060_v59 = vld [vmem:[%s2966_s10 + $0x720] sm:$0xff] }
 0x5e3   :  { %v811_v28 = vmax.f32 %v726_v16, 0.0  ;;  %1339 = vmatpush.bf16.msra.mxu1 %v1152_v2  ;;  %v1198_v2 = vpack.c.bf16 %v1053_v55, %v1052_v54  ;;  %v1074_v50 = vld [vmem:[%s2966_s10 + $0x790] sm:$0xff]  ;;  %v1075_v51 = vld [vmem:[%s2966_s10 + $0x798] sm:$0xff]  ;;  %v1044_v55 = vld [vmem:[%s2966_s10 + $0x6a0] sm:$0xff] }
 0x5e4   :  { %v824_v36 = vpack.c.bf16 %v808_v23, %v792_v21  ;;  %1381 = vmatpush.bf16.msrb.mxu0 %v1176_v10  ;;  %v1051_v10 = vld [vmem:[%s2966_s10 + $0x6d8] sm:$0xff]  ;;  %v1078_v21 = vld [vmem:[%s2966_s10 + $0x7b0] sm:$0xff]  ;;  %v1061_v60 = vld [vmem:[%s2966_s10 + $0x728] sm:$0xff] }
 0x5e5   :  { %v827_v41 = vpack.c.bf16 %v811_v28, %v795_v7  ;;  %1352 = vmatpush.bf16.msra.mxu3 %v1161_v18  ;;  %v697_v42 = vpop.f32.mrf.mxu3  ;;  %v1030_v18 = vld [vmem:[%s2966_s10 + $0x630] sm:$0xff]  ;;  %v1197_v20 = vpack.c.bf16 %v1051_v10, %v1050_v9  ;;  %v1079_v23 = vld [vmem:[%s2966_s10 + $0x7b8] sm:$0xff]  ;;  %v1064_v7 = vld [vmem:[%s2966_s10 + $0x740] sm:$0xff] }
 0x5e6   :  { %1366 = vmatpush.bf16.msrb.mxu2 %v1169_v24  ;;  %v698_v46 = vadd.f32 %v697_v42, %v534_v6  ;;  %v711_v47 = vpop.f32.mrf.mxu2  ;;  %1340 = vmatmul.bf16.vlgmr.msra.gmra.mxu1 %v824_v36  ;;  %v1187_v35 = vpack.c.bf16 %v1031_v19, %v1030_v18  ;;  %v1065_v28 = vld [vmem:[%s2966_s10 + $0x748] sm:$0xff]  ;;  %v1076_v36 = vld [vmem:[%s2966_s10 + $0x7a0] sm:$0xff]  ;;  %v1186_v42 = vpack.c.bf16 %v1029_v32, %v1028_v11  ;;  %v1043_v9 = vld [vmem:[%s2966_s10 + $0x698] sm:$0xff] }
 0x5e7   :  { %1388 = vmatpush.bf16.msrb.mxu1 %v1191_v13  ;;  %v712_v52 = vadd.f32 %v711_v47, %v535_v15  ;;  %1382 = vmatmul.bf16.vlgmr.msrb.gmra.mxu0 %v827_v41  ;;  %v2797_v13 = vpop.f32.mrf.mxu1  ;;  %v1067_v15 = vld [vmem:[%s2966_s10 + $0x758] sm:$0xff]  ;;  %v1204_v39 = vpack.c.bf16 %v1065_v28, %v1064_v7  ;;  %v1041_v7 = vld [vmem:[%s2966_s10 + $0x688] sm:$0xff] }
 0x5e8   :  { %1430 = vmatpush.bf16.msra.mxu0 %v1215_v17  ;;  %v809_v57 = vmax.f32 %v698_v46, 0.0  ;;  %v2805_v16 = vpop.f32.mrf.mxu0  ;;  %v1212_v17 = vpack.c.bf16 %v1081_v4, %v1080_v5  ;;  %v1205_v24 = vpack.c.bf16 %v1067_v15, %v1066_v12  ;;  %v1047_v41 = vld [vmem:[%s2966_s10 + $0x6b8] sm:$0xff]  ;;  %v1026_v46 = vld [vmem:[%s2966_s10 + $0x610] sm:$0xff]  ;;  %v1073_v5 = vld [vmem:[%s2966_s10 + $0x788] sm:$0xff] }
 0x5e9   :  { %v810_v61 = vmax.f32 %v712_v52, 0.0  ;;  %1353 = vmatpush.bf16.msra.mxu3 %v1160_v43  ;;  %v1062_v43 = vld [vmem:[%s2966_s10 + $0x730] sm:$0xff]  ;;  %v1027_v47 = vld [vmem:[%s2966_s10 + $0x618] sm:$0xff]  ;;  %v537_v52 = vperm.slane %v2647_v22, 4  ;;  %v1057_v11 = vld [vmem:[%s2966_s10 + $0x708] sm:$0xff] }
 0x5ea   :  { %v825_v1 = vpack.c.bf16 %v809_v57, %v793_v56  ;;  %1367 = vmatpush.bf16.msrb.mxu2 %v1168_v48  ;;  %v1203_v54 = vpack.c.bf16 %v1063_v44, %v1062_v43  ;;  %v1045_v56 = vld [vmem:[%s2966_s10 + $0x6a8] sm:$0xff]  ;;  %v540_v57 = vperm.slane %v2647_v22, 7  ;;  %v1058_v15 = vld [vmem:[%s2966_s10 + $0x710] sm:$0xff] }
 0x5eb   :  { %1389 = vmatpush.bf16.msrb.mxu1 %v1190_v29  ;;  %v826_v6 = vpack.c.bf16 %v810_v61, %v794_v25  ;;  %v1211_v29 = vpack.c.bf16 %v1079_v23, %v1078_v21  ;;  %v1209_v61 = vpack.c.bf16 %v1075_v51, %v1074_v50  ;;  %v738_v4 = vadd.f32 %v2797_v13, %v537_v52  ;;  %v1059_v13 = vld [vmem:[%s2966_s10 + $0x718] sm:$0xff] }
 0x5ec   :  { %1431 = vmatpush.bf16.msra.mxu0 %v1214_v37  ;;  %1354 = vmatmul.bf16.vlgmr.msra.gmra.mxu3 %v825_v1  ;;  %v1077_v37 = vld [vmem:[%s2966_s10 + $0x7a8] sm:$0xff]  ;;  %v1194_v1 = vpack.c.bf16 %v1045_v56, %v1044_v55  ;;  %v780_v10 = vadd.f32 %v2805_v16, %v540_v57  ;;  %v539_v21 = vperm.slane %v2647_v22, 6  ;;  %v1201_v27 = vpack.c.bf16 %v1059_v13, %v1058_v15 }
 0x5ed   :  { %1402 = vmatpush.bf16.msrb.mxu3 %v1199_v49  ;;  %1368 = vmatmul.bf16.vlgmr.msrb.gmra.mxu2 %v826_v6  ;;  %v2837_v33 = vpop.f32.mrf.mxu3  ;;  %v1210_v45 = vpack.c.bf16 %v1077_v37, %v1076_v36  ;;  %v1195_v49 = vpack.c.bf16 %v1047_v41, %v1046_v40  ;;  %v1202_v6 = vpack.c.bf16 %v1061_v60, %v1060_v59 }
 0x5ee   :  { %1416 = vmatpush.bf16.msra.mxu2 %v1207_v53  ;;  %v2845_v38 = vpop.f32.mrf.mxu2  ;;  %v799_v28 = vmax.f32 %v780_v10, 0.0 }
 0x5ef   :  { %1390 = vmatpush.bf16.msrb.mxu1 %v1189_v58  ;;  %v739_v48 = vpop.f32.mrf.mxu1  ;;  %v1185_v58 = vpack.c.bf16 %v1027_v47, %v1026_v46  ;;  %v766_v36 = vadd.f32 %v2845_v38, %v539_v21 }
 0x5f0   :  { %1432 = vmatpush.bf16.msra.mxu0 %v1213_v62  ;;  %v781_v53 = vpop.f32.mrf.mxu0  ;;  %v740_v25 = vadd.f32 %v739_v48, %v537_v52  ;;  %v1024_v62 = vld [vmem:[%s2966_s10 + $0x600] sm:$0xff] }
 0x5f1   :  { %1403 = vmatpush.bf16.msrb.mxu3 %v1198_v2  ;;  %v782_v0 = vadd.f32 %v781_v53, %v540_v57  ;;  %v1072_v2 = vld [vmem:[%s2966_s10 + $0x780] sm:$0xff]  ;;  %v1184_v12 = vpack.c.bf16 %v1025_v63, %v1024_v62  ;;  %v798_v44 = vmax.f32 %v766_v36, 0.0 }
 0x5f2   :  { %1417 = vmatpush.bf16.msra.mxu2 %v1206_v8  ;;  %v1042_v8 = vld [vmem:[%s2966_s10 + $0x690] sm:$0xff]  ;;  %v812_v18 = vmax.f32 %v740_v25, 0.0  ;;  %v1602_v53 = vld [vmem:[%s2967_s11] ss:$0 sm:$0xff] }
 0x5f3   :  { %1391 = vmatpush.bf16.msrb.mxu1 %v1188_v14  ;;  %v815_v16 = vmax.f32 %v782_v0, 0.0  ;;  %v1193_v23 = vpack.c.bf16 %v1043_v9, %v1042_v8 }
 0x5f4   :  { %1433 = vmatpush.bf16.msra.mxu0 %v1212_v17  ;;  %v538_v17 = vperm.slane %v2647_v22, 5  ;;  %v1056_v22 = vld [vmem:[%s2966_s10 + $0x700] sm:$0xff] }
 0x5f5   :  { %1404 = vmatpush.bf16.msrb.mxu3 %v1197_v20  ;;  %v753_v14 = vpop.f32.mrf.mxu3  ;;  %v1208_v20 = vpack.c.bf16 %v1073_v5, %v1072_v2  ;;  %v831_v37 = vpack.c.bf16 %v815_v16, %v799_v28  ;;  %v1200_v41 = vpack.c.bf16 %v1057_v11, %v1056_v22 }
 0x5f6   :  { %1418 = vmatpush.bf16.msra.mxu2 %v1205_v24  ;;  %v767_v19 = vpop.f32.mrf.mxu2  ;;  %v796_v24 = vmax.f32 %v738_v4, 0.0  ;;  %v754_v26 = vadd.f32 %v753_v14, %v538_v17  ;;  %v752_v32 = vadd.f32 %v2837_v33, %v538_v17 }
 0x5f7   :  { %1392 = vmatpush.bf16.msrb.mxu1 %v1187_v35  ;;  %v1040_v35 = vld [vmem:[%s2966_s10 + $0x680] sm:$0xff] }
 0x5f8   :  { %1434 = vmatpush.bf16.msra.mxu0 %v1211_v29  ;;  %v768_v29 = vadd.f32 %v767_v19, %v539_v21  ;;  %v813_v40 = vmax.f32 %v754_v26, 0.0  ;;  %v797_v43 = vmax.f32 %v752_v32, 0.0 }
 0x5f9   :  { %1405 = vmatpush.bf16.msrb.mxu3 %v1196_v34  ;;  %v828_v34 = vpack.c.bf16 %v812_v18, %v796_v24 }
 0x5fa   :  { %1419 = vmatpush.bf16.msra.mxu2 %v1204_v39  ;;  %v1192_v39 = vpack.c.bf16 %v1041_v7, %v1040_v35 }
 0x5fb   :  { %1393 = vmatpush.bf16.msrb.mxu1 %v1186_v42  ;;  %v814_v42 = vmax.f32 %v768_v29, 0.0 }
 0x5fc   :  { %1435 = vmatpush.bf16.msra.mxu0 %v1210_v45  ;;  %v829_v45 = vpack.c.bf16 %v813_v40, %v797_v43 }
 0x5fd   :  { %1406 = vmatpush.bf16.msrb.mxu3 %v1195_v49  ;;  %v830_v46 = vpack.c.bf16 %v814_v42, %v798_v44 }
 0x5fe   :  { %1420 = vmatpush.bf16.msra.mxu2 %v1203_v54 }
 0x5ff   :  { %1394 = vmatpush.bf16.msrb.mxu1 %v1185_v58 }
 0x600   :  { %1436 = vmatpush.bf16.msra.mxu0 %v1209_v61 }
 0x601   :  { %1407 = vmatpush.bf16.msrb.mxu3 %v1194_v1 }
 0x602   :  { %1421 = vmatpush.bf16.msra.mxu2 %v1202_v6 }
 0x603   :  { %1395 = vmatpush.bf16.msrb.mxu1 %v1184_v12 }
 0x604   :  { %1437 = vmatpush.bf16.msra.mxu0 %v1208_v20 }
 0x605   :  { %1408 = vmatpush.bf16.msrb.mxu3 %v1193_v23 }
 0x606   :  { %1422 = vmatpush.bf16.msra.mxu2 %v1201_v27  ;;  %1396 = vmatmul.bf16.vlgmr.msrb.gmra.mxu1 %v828_v34 }
 0x607   :  { %1438 = vmatmul.bf16.vlgmr.msra.gmra.mxu0 %v831_v37 }
 0x609   :  { %1409 = vmatpush.bf16.msrb.mxu3 %v1192_v39 }
 0x60a   :  { %1423 = vmatpush.bf16.msra.mxu2 %v1200_v41 }
 0x60c   :  { %1410 = vmatmul.bf16.vlgmr.msrb.gmra.mxu3 %v829_v45 }
 0x60d   :  { %1424 = vmatmul.bf16.vlgmr.msra.gmra.mxu2 %v830_v46 }
 0x643   :  { %v1229_v33 = vpop.f32.mrf.mxu1 }
 0x644   :  { %v1271_v48 = vpop.f32.mrf.mxu0  ;;  %v1230_v55 = vadd.f32 %v1602_v53, %v1229_v33 }
 0x64b   :  { %v1231_v49 = vpop.f32.mrf.mxu1 }
 0x64c   :  { %v1273_v52 = vpop.f32.mrf.mxu0  ;;  %v1232_v61 = vadd.f32 %v1602_v53, %v1231_v49 }
 0x64f   :  { %v1243_v47 = vpop.f32.mrf.mxu3 }
 0x650   :  { %v1257_v38 = vpop.f32.mrf.mxu2  ;;  %v1244_v56 = vadd.f32 %v1243_v47, %v1230_v55 }
 0x652   :  { %v1258_v60 = vadd.f32 %v1257_v38, %v1244_v56 }
 0x653   :  { %v1285_v54 = vpop.f32.mrf.mxu1 }
 0x654   :  { %v1327_v59 = vpop.f32.mrf.mxu0  ;;  %v1272_v62 = vadd.f32 %v1271_v48, %v1258_v60 }
 0x656   :  { %v1286_v1 = vadd.f32 %v1285_v54, %v1272_v62 }
 0x657   :  { %v1245_v50 = vpop.f32.mrf.mxu3 }
 0x658   :  { %v1259_v51 = vpop.f32.mrf.mxu2  ;;  %v1246_v63 = vadd.f32 %v1245_v50, %v1232_v61 }
 0x65a   :  { %v1260_v2 = vadd.f32 %v1259_v51, %v1246_v63 }
 0x65b   :  { %v1287_v25 = vpop.f32.mrf.mxu1 }
 0x65c   :  { %v1329_v4 = vpop.f32.mrf.mxu0  ;;  %v1274_v9 = vadd.f32 %v1273_v52, %v1260_v2 }
 0x65e   :  { %v1288_v14 = vadd.f32 %v1287_v25, %v1274_v9 }
 0x65f   :  { %v1299_v57 = vpop.f32.mrf.mxu3 }
 0x660   :  { %v1313_v58 = vpop.f32.mrf.mxu2  ;;  %v1300_v6 = vadd.f32 %v1299_v57, %v1286_v1 }
 0x662   :  { %v1314_v10 = vadd.f32 %v1313_v58, %v1300_v6 }
 0x663   :  { %v1341_v8 = vpop.f32.mrf.mxu1 }
 0x664   :  { %v1328_v15 = vadd.f32 %v1327_v59, %v1314_v10  ;;  %v1383_v18 = vpop.f32.mrf.mxu0 }
 0x666   :  { %v1342_v20 = vadd.f32 %v1341_v8, %v1328_v15 }
 0x667   :  { %v1301_v0 = vpop.f32.mrf.mxu3 }
 0x668   :  { %v1315_v5 = vpop.f32.mrf.mxu2  ;;  %v1302_v13 = vadd.f32 %v1301_v0, %v1288_v14 }
 0x66a   :  { %v1316_v21 = vadd.f32 %v1315_v5, %v1302_v13 }
 0x66b   :  { %v1343_v19 = vpop.f32.mrf.mxu1 }
 0x66c   :  { %v1330_v23 = vadd.f32 %v1329_v4, %v1316_v21  ;;  %v1385_v35 = vpop.f32.mrf.mxu0 }
 0x66e   :  { %v1344_v28 = vadd.f32 %v1343_v19, %v1330_v23 }
 0x66f   :  { %v1355_v12 = vpop.f32.mrf.mxu3 }
 0x670   :  { %v1369_v17 = vpop.f32.mrf.mxu2  ;;  %v1356_v16 = vadd.f32 %v1355_v12, %v1342_v20  ;;  %v1603_v12 = vld [vmem:[%s2968_s12] ss:$0 sm:$0xff]  ;;  %s1690_s12 = smov [#allocation2]  }
 0x671   :  { %s1526_s6 = sshll.u32 %s1690_s12, 4  ;;  %s1527_s6 = int_to_ptr.vmem [resolvable:$true] %s1526_s6 }
 0x672   :  { %v1370_v26 = vadd.f32 %v1369_v17, %v1356_v16  ;;  %v1604_v17 = vld [vmem:[%s2969_s13] ss:$0 sm:$0xff]  ;;  %s1528_s13 = sshll.u32 %s2970_s14, 4  ;;  %s1693_s14 = smov [#allocation4]   ;;  %s1529_s13 = int_to_ptr.hbm [resolvable:$true] %s1528_s13 }
 0x673   :  { %s1540_s9 = sshll.u32 %s1693_s14, 4  ;;  %s1541_s9 = int_to_ptr.vmem [resolvable:$true] %s1540_s9 }
 0x674   :  { %v1384_v22 = vadd.f32 %v1383_v18, %v1370_v26 }
 0x677   :  { %v1357_v24 = vpop.f32.mrf.mxu3 }
 0x678   :  { %v1371_v27 = vpop.f32.mrf.mxu2  ;;  %v1358_v29 = vadd.f32 %v1357_v24, %v1344_v28 }
 0x67a   :  { %v1372_v34 = vadd.f32 %v1371_v27, %v1358_v29 }
 0x67c   :  { %v1386_v42 = vadd.f32 %v1385_v35, %v1372_v34 }
 0x683   :  { %v1397_v7 = vpop.f32.mrf.mxu1 }
 0x684   :  { %v1398_v11 = vadd.f32 %v1397_v7, %v1384_v22  ;;  %v1439_v39 = vpop.f32.mrf.mxu0 }
 0x68b   :  { %v1399_v41 = vpop.f32.mrf.mxu1 }
 0x68c   :  { %v1400_v44 = vadd.f32 %v1399_v41, %v1386_v42  ;;  %v1441_v49 = vpop.f32.mrf.mxu0 }
 0x68f   :  { %v1411_v32 = vpop.f32.mrf.mxu3 }
 0x690   :  { %v1412_v36 = vadd.f32 %v1411_v32, %v1398_v11  ;;  %v1425_v37 = vpop.f32.mrf.mxu2 }
 0x692   :  { %v1426_v40 = vadd.f32 %v1425_v37, %v1412_v36 }
 0x694   :  { %v1440_v43 = vadd.f32 %v1439_v39, %v1426_v40 }
 0x696   :  { %v1444_v45 = vadd.f32 %v1440_v43, %v2000_v30 }
 0x697   :  { %v1413_v46 = vpop.f32.mrf.mxu3 }
 0x698   :  { %v1414_v33 = vadd.f32 %v1413_v46, %v1400_v44  ;;  %v1446_v47 = vsel %vm66_vm0, %v1444_v45, 0.0  ;;  %v1427_v38 = vpop.f32.mrf.mxu2 }
 0x699   :  { %1447 = vadd.xlane.f32.xlu1 %v1446_v47 }
 0x69a   :  { %v1428_v48 = vadd.f32 %v1427_v38, %v1414_v33 }
 0x69c   :  { %v1442_v50 = vadd.f32 %v1441_v49, %v1428_v48 }
 0x69e   :  { %v1445_v51 = vadd.f32 %v1442_v50, %v2002_v31 }
 0x6a0   :  { %v1449_v52 = vsel %vm66_vm0, %v1445_v51, 0.0 }
 0x6a1   :  { %1450 = vadd.xlane.f32.xlu1 %v1449_v52 }
 0x70c   :  { %v1448_v53 = vpop.xlane.xlu1 %1447 }
 0x70d   :  { %v1452_v54 = vmul.f32 %v1448_v53, %v1865_v3 }
 0x70f   :  { %v1454_v55 = vsub.f32 %v1444_v45, %v1452_v54 }
 0x711   :  { %v1456_v56 = vmul.f32 %v1454_v55, %v1454_v55 }
 0x713   :  { %v1458_v30 = vsel %vm66_vm0, %v1456_v56, 0.0 }
 0x714   :  { %1459 = vadd.xlane.f32.xlu1 %v1458_v30  ;;  %v1451_v57 = vpop.xlane.xlu1 %1450 }
 0x715   :  { %v1453_v58 = vmul.f32 %v1451_v57, %v1865_v3 }
 0x717   :  { %v1455_v59 = vsub.f32 %v1445_v51, %v1453_v58 }
 0x719   :  { %v1457_v60 = vmul.f32 %v1455_v59, %v1455_v59 }
 0x71b   :  { %v1461_v25 = vsel %vm66_vm0, %v1457_v60, 0.0 }
 0x71c   :  { %1462 = vadd.xlane.f32.xlu1 %v1461_v25 }
 0x787   :  { %v1460_v31 = vpop.xlane.xlu1 %1459 }
 0x788   :  { %v1464_v61 = vmul.f32 %v1460_v31, %v1865_v3 }
 0x78a   :  { %v1466_v62 = vadd.f32 1e-05, %v1464_v61 }
 0x78c   :  { %1627 = vrsqrt.f32 %v1466_v62  ;;  %vm1474_vm12 = vweird.f32 %v1466_v62 }
 0x78f   :  { %v1463_v63 = vpop.xlane.xlu1 %1462 }
 0x790   :  { %v1465_v0 = vmul.f32 %v1463_v63, %v1865_v3 }
 0x792   :  { %v1628_v1 = vpop.eup %1627  ;;  %v1467_v2 = vadd.f32 1e-05, %v1465_v0 }
 0x793   :  { %v1469_v5 = vmul.f32 %v1628_v1, %v1466_v62  ;;  %vm1475_vm11 = vweird.f32 %v1628_v1 }
 0x794   :  { %1629 = vrsqrt.f32 %v1467_v2  ;;  %vm1476_vm13 = vmor %vm1474_vm12, %vm1475_vm11  ;;  %vm1484_vm15 = vweird.f32 %v1467_v2 }
 0x795   :  { %v1470_v4 = vmul.f32 %v1628_v1, %v1469_v5 }
 0x797   :  { %v1471_v6 = vmul.f32 0.5, %v1470_v4 }
 0x799   :  { %v1472_v8 = vsub.f32 1.5, %v1471_v6 }
 0x79a   :  { %v1630_v9 = vpop.eup %1629 }
 0x79b   :  { %v1473_v10 = vmul.f32 %v1628_v1, %v1472_v8  ;;  %v1479_v14 = vmul.f32 %v1630_v9, %v1467_v2  ;;  %vm1485_vm14 = vweird.f32 %v1630_v9 }
 0x79c   :  { %vm1486_vm1 = vmor %vm1484_vm15, %vm1485_vm14 }
 0x79d   :  { %v1477_v15 = vsel %vm1476_vm13, %v1628_v1, %v1473_v10  ;;  %v1480_v13 = vmul.f32 %v1630_v9, %v1479_v14 }
 0x79e   :  { %v1488_v3 = vmul.f32 %v1477_v15, %v1454_v55 }
 0x79f   :  { %v1481_v18 = vmul.f32 0.5, %v1480_v13 }
 0x7a0   :  { %v1494_v19 = vmul.f32 %v1603_v12, %v1488_v3 }
 0x7a1   :  { %v1482_v20 = vsub.f32 1.5, %v1481_v18 }
 0x7a2   :  { %v1500_v21 = vadd.f32 %v1604_v17, %v1494_v19 }
 0x7a3   :  { %v1483_v16 = vmul.f32 %v1630_v9, %v1482_v20 }
 0x7a4   :  { %1502 = vst.msk [vmem:[#allocation2] sm:$0xff] %vm66_vm0, %v1500_v21  ;;  %v1504_v23 = vsel %vm66_vm0, %v1500_v21, 0.0 }
 0x7a5   :  { %v1487_v24 = vsel %vm1486_vm1, %v1630_v9, %v1483_v16  ;;  %v1505_v26 = vrot.slane %v1504_v23, 4 }
 0x7a6   :  { %v1489_v27 = vmul.f32 %v1487_v24, %v1455_v59 }
 0x7a7   :  { %v1506_v35 = vadd.f32 %v1505_v26, %v1504_v23 }
 0x7a8   :  { %v1495_v7 = vmul.f32 %v1603_v12, %v1489_v27 }
 0x7a9   :  { %v1507_v29 = vrot.slane %v1506_v35, 2 }
 0x7aa   :  { %v1501_v28 = vadd.f32 %v1604_v17, %v1495_v7 }
 0x7ab   :  { %v1508_v32 = vadd.f32 %v1507_v29, %v1506_v35 }
 0x7ac   :  { %1503 = vst.msk [vmem:[#allocation2 + $0x8] sm:$0xff] %vm66_vm0, %v1501_v28  ;;  %v1511_v22 = vsel %vm66_vm0, %v1501_v28, 0.0  ;;  %vm1520_vm0 = vcmask 254976  }
 0x7ad   :  { %v1512_v11 = vrot.slane %v1511_v22, 4  ;;  %1534 = dma.vmem_to_hbm [thread:$0]  %s1527_s6, 256, %s1529_s13, [#allocation3], %s1691_s20, %s1691_s20, %s1692_s21   ;;  %v1509_v37 = vrot.slane %v1508_v32, 1 }
 0x7af   :  { %v1513_v34 = vadd.f32 %v1512_v11, %v1511_v22  ;;  %v1510_v41 = vadd.f32 %v1509_v37, %v1508_v32 }
 0x7b1   :  { %v1514_v36 = vrot.slane %v1513_v34, 2 }
 0x7b3   :  { %v1515_v39 = vadd.f32 %v1514_v36, %v1513_v34 }
 0x7b5   :  { %v1516_v40 = vrot.slane %v1515_v39, 1 }
 0x7b7   :  { %v1517_v42 = vadd.f32 %v1516_v40, %v1515_v39 }
 0x7b9   :  { %v1519_v43 = vsel %vm1518_vm2, %v1510_v41, %v1517_v42 }
 0x7ba   :  { %1521 = vst.msk [vmem:[#allocation4] sm:$0x3] %vm1520_vm0, %v1519_v43 }
 0x7bb   :  { %1545 = dma.vmem_to_hbm [thread:$0]  %s1541_s9, 32, %s1543_s23, [#allocation5]  }
 0x7bc   :  { %1679 = dma.done.wait [#allocation3], 256  }
 0x7bd   :  { %1680 = vsyncadd [#allocation3], 4294967040 }
 0x7be   :  { %1681 = dma.done.wait [#allocation5], 32  }
 0x7bf   :  { %1682 = vsyncadd [#allocation5], 4294967264 }
 0x7c0   :  { %1554 = vsyncpa [#allocation3], 1 }
 0x7c1   :  { %1555 = vsyncpa [#allocation5], 1 }

</bundles_post_ra>
